<compile_context>
chip_gen: v5e
topology: v5e:2x2
jax: 0.10.0
libtpu: 0.0.40
codegen_flags: <defaults>
</compile_context>

<pallas_src>
import jax
import jax.numpy as jnp
from jax.experimental import pallas as pl
from jax.experimental.pallas import tpu as pltpu

EPS = 1e-05
VMEM_BUDGET_BYTES = 40 << 20   # per-step working-set target (fits v7x's 64 MiB VMEM)


# ----------------------------------------------------------------------------
# Pallas kernel: 1x1 conv (bf16 MXU matmul, C reduced on grid axis k)
#                + pos-embedding bias + GroupNorm(1 group), all in NCHW layout
# ----------------------------------------------------------------------------
def proj_gn_kernel(x_ref, wt_ref, pos_ref, g_ref, b_ref, o_ref):
    # x_ref:   (block_n, c_tile, HW)  f32/bf16  backbone features (NCHW, HW flat)
    # wt_ref:  (C_out, c_tile)        bf16      transposed 1x1-conv weight tile
    # pos_ref: (C_out, HW)            f32       precomputed pos-embedding bias
    # g_ref:   (C_out, 1)             f32       GroupNorm gamma
    # b_ref:   (C_out, 1)             f32       GroupNorm beta
    # o_ref:   (block_n, C_out, HW)   f32       accumulator across k; final output
    k = pl.program_id(1)
    nk = pl.num_programs(1)
    block_n, c_out, hw = o_ref.shape

    # k == 0: seed the accumulator with the (sample-independent) position-
    # embedding contribution of the 1x1 conv.
    @pl.when(k == 0)
    def _init():
        pos = pos_ref[...]
        for b in range(block_n):
            o_ref[b] = pos

    # Accumulate this channel tile: per sample (C_out, c_tile) @ (c_tile, HW).
    # bf16 operands, f32 accumulation on the MXU, streamed into o_ref.
    for b in range(block_n):
        xb = x_ref[b].astype(jnp.bfloat16)
        o_ref[b] += jax.lax.dot_general(
            wt_ref[...], xb,
            dimension_numbers=(((1,), (0,)), ((), ())),
            preferred_element_type=jnp.float32)

    # Last k step: GroupNorm(num_groups=1) per sample over (C_out, HW),
    # exact two-pass mean/var, normalized in place (no big extra temporaries).
    @pl.when(k == nk - 1)
    def _finalize():
        gamma = g_ref[...]          # (C_out, 1) broadcasts over (C_out, HW)
        beta = b_ref[...]
        inv_n = 1.0 / float(c_out * hw)
        for b in range(block_n):
            y = o_ref[b]                                  # (C_out, HW) f32, in VMEM
            mean = jnp.sum(y, keepdims=True) * inv_n      # (1, 1)
            d = y - mean
            var = jnp.sum(d * d, keepdims=True) * inv_n   # (1, 1)
            o_ref[b] = (d * jax.lax.rsqrt(var + EPS)) * gamma + beta


# ----------------------------------------------------------------------------
# Block-size selection (VMEM-budget driven, v7x-aware)
# ----------------------------------------------------------------------------
def _choose_c_tile(C_bb, max_tile=512):
    """Largest 128-multiple divisor of C_bb that is <= max_tile (or C_bb itself)."""
    if C_bb <= max_tile or C_bb % 128 != 0:
        return C_bb
    for t in range(min(max_tile, C_bb), 127, -128):
        if C_bb % t == 0 and t % 128 == 0:
            return t
    return C_bb


def _choose_block_n(N, HW, C_out, c_tile, x_itemsize, vmem_budget):
    """Largest divisor of N that fits the per-step VMEM budget, capped at N//2
    so the parallel grid axis is >= 2 (keeps both v7x TensorCores busy)."""
    per_sample = (2 * c_tile * HW * x_itemsize   # x block (double-buffered)
                  + 2 * C_out * HW * 4           # f32 output block (double-buffered)
                  + 2 * C_out * HW * 4)          # GroupNorm epilogue temporaries
    cap = N // 2 if N >= 2 else 1
    best = 1
    for b in range(1, cap + 1):
        if N % b == 0 and b * per_sample <= vmem_budget:
            best = b
    return best


def proj_groupnorm_nchw(x_ncl, wt_bf16, pos_bias, gamma, beta, *, block_n, c_tile):
    """x_ncl: (N, C_bb, HW) f32/bf16 -> (N, C_out, HW) f32 (NCHW layout)."""
    N, C_bb, HW = x_ncl.shape
    C_out = wt_bf16.shape[0]
    assert N % block_n == 0 and C_bb % c_tile == 0
    grid = (N // block_n, C_bb // c_tile)

    # Explicit scoped-VMEM limit derived from the actual block footprint
    # (defaults cap far below what physical VMEM allows at production sizes).
    x_bytes = 2 * block_n * c_tile * HW * x_ncl.dtype.itemsize
    w_bytes = 2 * C_out * c_tile * 2
    pos_bytes = 2 * C_out * HW * 4
    out_bytes = 2 * block_n * C_out * HW * 4
    gn_tmp = 2 * C_out * HW * 4
    misc = 4 * C_out * 4 + (1 << 20)
    needed = x_bytes + w_bytes + pos_bytes + out_bytes + gn_tmp + misc
    vmem_limit = int(min(max(2 * needed, 32 << 20), 64 << 20))

    flops = 2 * N * HW * C_bb * C_out
    bytes_accessed = (x_ncl.size * x_ncl.dtype.itemsize
                      + wt_bf16.size * 2 * (N // block_n)
                      + pos_bias.size * 4
                      + gamma.size * 4 + beta.size * 4
                      + N * HW * C_out * 4)

    return pl.pallas_call(
        proj_gn_kernel,
        out_shape=jax.ShapeDtypeStruct((N, C_out, HW), jnp.float32),
        grid_spec=pltpu.PrefetchScalarGridSpec(
            num_scalar_prefetch=0,
            grid=grid,
            in_specs=[
                pl.BlockSpec((block_n, c_tile, HW), lambda n, k: (n, k, 0)),
                pl.BlockSpec((C_out, c_tile), lambda n, k: (0, k)),
                pl.BlockSpec((C_out, HW), lambda n, k: (0, 0)),
                pl.BlockSpec((C_out, 1), lambda n, k: (0, 0)),
                pl.BlockSpec((C_out, 1), lambda n, k: (0, 0)),
            ],
            out_specs=pl.BlockSpec((block_n, C_out, HW), lambda n, k: (n, 0, 0)),
        ),
        compiler_params=pltpu.CompilerParams(
            dimension_semantics=("parallel", "arbitrary"),
            vmem_limit_bytes=vmem_limit),
        cost_estimate=pl.CostEstimate(
            flops=flops, transcendentals=N, bytes_accessed=bytes_accessed),
    )(x_ncl, wt_bf16, pos_bias, gamma, beta)


# ----------------------------------------------------------------------------
# Glue (plain JAX): pos embedding, layout plumbing, mask interpolation
# ----------------------------------------------------------------------------
def box8_position_embedding_8hw(H, W, dtype=jnp.float32):
    """8 box features per feature cell: (x1, y1, x2, y2, cx, cy, w, h),
    normalized to [0, 1].  Returned channels-first flat: (8, H*W)."""
    ys = jnp.arange(H, dtype=dtype)
    xs = jnp.arange(W, dtype=dtype)
    yy, xx = jnp.meshgrid(ys, xs, indexing="ij")            # (H, W)
    x1 = xx / W
    y1 = yy / H
    x2 = (xx + 1.0) / W
    y2 = (yy + 1.0) / H
    cx = 0.5 * (x1 + x2)
    cy = 0.5 * (y1 + y2)
    bw = jnp.full_like(xx, 1.0 / W)
    bh = jnp.full_like(yy, 1.0 / H)
    pos = jnp.stack([x1, y1, x2, y2, cx, cy, bw, bh], axis=0)   # (8, H, W)
    return pos.reshape(8, H * W)


class ImageEncoderPallas:
    """Mirrors ImageEncoder(backbone='resnet50', out_channels, with_pos=True)
    forward semantics from the backbone feature map onward (NCHW in / NCHW out)."""

    def __init__(self, backbone_channels, out_channels, key, max_c_tile=512):
        self.with_pos = True
        in_channels = backbone_channels + 8
        # Conv2d(in_channels, out_channels, 1x1, bias=False) with
        # xavier_normal_(gain=calculate_gain('relu')=sqrt(2)).
        gain = jnp.sqrt(2.0)
        std = gain * jnp.sqrt(2.0 / (in_channels + out_channels))
        w_full = std * jax.random.normal(key, (in_channels, out_channels),
                                         dtype=jnp.float32)       # (C_in, C_out)
        # Backbone part: pre-transposed to (C_out, C_bb) bf16 so the kernel's
        # per-sample matmul (C_out, c_tile) @ (c_tile, HW) needs no transposes.
        self.w_bb_t_bf16 = w_full[:backbone_channels].T.astype(jnp.bfloat16)
        # The 8 position rows stay f32; they are folded into a precomputed
        # per-position bias (sample-independent) instead of a channel concat.
        self.w_pos = w_full[backbone_channels:]                    # (8, C_out) f32
        # GroupNorm(1, out_channels) affine params (default init: ones / zeros),
        # stored as (C_out, 1) to broadcast along the channel (sublane) axis.
        self.gamma = jnp.ones((out_channels, 1), dtype=jnp.float32)
        self.beta = jnp.zeros((out_channels, 1), dtype=jnp.float32)
        self.out_channels = out_channels
        self.backbone_channels = backbone_channels
        self.max_c_tile = max_c_tile

    def __call__(self, feat_nchw, mask=None):
        # feat_nchw: backbone output, (N, C_bb, H, W), f32 or bf16.
        N, C_bb, H, W = feat_nchw.shape
        HW = H * W

        # NCHW consumed directly: only a free reshape (contiguous) — no HBM
        # transpose pass, no wrapper cast pass (bf16 cast happens in-kernel).
        x_ncl = feat_nchw.reshape(N, C_bb, HW)

        # Position-embedding contribution to the 1x1 conv, as a (C_out, HW) bias.
        pos8 = box8_position_embedding_8hw(H, W)                   # (8, HW) f32
        pos_bias = self.w_pos.T @ pos8                             # (C_out, HW) f32

        c_tile = _choose_c_tile(C_bb, self.max_c_tile)
        block_n = _choose_block_n(N, HW, self.out_channels, c_tile,
                                  x_ncl.dtype.itemsize, VMEM_BUDGET_BYTES)

        y_ncl = proj_groupnorm_nchw(x_ncl, self.w_bb_t_bf16, pos_bias,
                                    self.gamma, self.beta,
                                    block_n=block_n, c_tile=c_tile)
        # Output is already NCHW; reshape is free.
        y = y_ncl.reshape(N, self.out_channels, H, W)

        x_mask = None
        if mask is not None:
            # F.interpolate(mode='bilinear', align_corners=False) then threshold.
            Nm, Cm = mask.shape[0], mask.shape[1]
            m = jax.image.resize(mask, (Nm, Cm, H, W), method="bilinear",
                                 antialias=False)
            x_mask = (m > 0.5).astype(jnp.int32)   # torch .long() -> int32 (no x64)
        return y, x_mask


# ----------------------------------------------------------------------------
# Plain-JAX reference (mirrors the kernel's bf16 matmul numerics)
# ----------------------------------------------------------------------------
def _reference(enc, feat):
    N, C_bb, H, W = feat.shape
    x = feat.astype(jnp.bfloat16).astype(jnp.float32).reshape(N, C_bb, H * W)
    w_t = enc.w_bb_t_bf16.astype(jnp.float32)                      # (C_out, C_bb)
    y = jnp.einsum("ncl,dc->ndl", x, w_t,
                   precision=jax.lax.Precision.HIGHEST)            # 1x1 conv (bb part)
    pos8 = box8_position_embedding_8hw(H, W)
    pos_bias = enc.w_pos.T @ pos8                                  # (C_out, HW)
    y = y + pos_bias[None]
    mean = jnp.mean(y, axis=(1, 2), keepdims=True)
    var = jnp.mean((y - mean) ** 2, axis=(1, 2), keepdims=True)
    y = (y - mean) / jnp.sqrt(var + EPS)
    y = y * enc.gamma.reshape(1, -1, 1) + enc.beta.reshape(1, -1, 1)
    return y.reshape(N, -1, H, W)


if __name__ == "__main__":
    key = jax.random.PRNGKey(0)
    k_feat, k_mask, k_w = jax.random.split(key, 3)

    # Small synthetic "backbone output": N=4, C_bb=256 (stands in for 2048), 8x8.
    # max_c_tile=128 so the channel-reduction grid axis (n_k=2) is exercised.
    N, C_bb, H, W = 4, 256, 8, 8
    C_out = 128
    feat = jax.random.normal(k_feat, (N, C_bb, H, W), dtype=jnp.float32)
    mask = jax.random.uniform(k_mask, (N, 1, 16, 16), dtype=jnp.float32)

    enc = ImageEncoderPallas(backbone_channels=C_bb, out_channels=C_out,
                             key=k_w, max_c_tile=128)

    y, x_mask = enc(feat, mask)
    y = jax.block_until_ready(y)
    x_mask = jax.block_until_ready(x_mask)

    y_ref = _reference(enc, feat)
    assert y.shape == (N, C_out, H, W)
    assert x_mask.shape == (N, 1, H, W)
    assert jnp.allclose(y, y_ref, atol=2e-3, rtol=2e-3)

    print("KERNEL_OK")
</pallas_src>

<mosaic_0001>
module attributes {stable_mosaic.version = 11 : i64} {
  func.func @proj_gn_kernel(%arg0: i32, %arg1: i32, %arg2: memref<2x128x64xf32, #tpu.memory_space<vmem>>, %arg3: memref<128x128xbf16, #tpu.memory_space<vmem>>, %arg4: memref<128x64xf32, #tpu.memory_space<vmem>>, %arg5: memref<128x1xf32, #tpu.memory_space<vmem>>, %arg6: memref<128x1xf32, #tpu.memory_space<vmem>>, %arg7: memref<2x128x64xf32, #tpu.memory_space<vmem>>) attributes {dimension_semantics = [#tpu.dimension_semantics<parallel>, #tpu.dimension_semantics<arbitrary>], iteration_bounds = array<i64: 2, 2>, scalar_prefetch = 0 : i64, scratch_operands = 0 : i64, tpu.core_type = #tpu.core_type<tc>, window_params = [{transform_indices = @transform_0, window_bounds = array<i64: 2, 128, 64>}, {transform_indices = @transform_1, window_bounds = array<i64: 128, 128>}, {pipeline_mode = #tpu.pipeline_mode<synchronous>, transform_indices = @transform_2, window_bounds = array<i64: 128, 64>}, {pipeline_mode = #tpu.pipeline_mode<synchronous>, transform_indices = @transform_3, window_bounds = array<i64: 128, 1>}, {pipeline_mode = #tpu.pipeline_mode<synchronous>, transform_indices = @transform_4, window_bounds = array<i64: 128, 1>}, {transform_indices = @transform_5, window_bounds = array<i64: 2, 128, 64>}]} {
    %c0_i32 = arith.constant 0 : i32
    %0 = arith.cmpi eq, %arg1, %c0_i32 : i32
    %1 = arith.extui %0 : i1 to i32
    %c0_i32_0 = arith.constant 0 : i32
    %2 = arith.cmpi ne, %1, %c0_i32_0 : i32
    scf.if %2 {
      %c0_23 = arith.constant 0 : index
      %c0_24 = arith.constant 0 : index
      %28 = vector.load %arg4[%c0_23, %c0_24] : memref<128x64xf32, #tpu.memory_space<vmem>>, vector<128x64xf32>
      %c0_25 = arith.constant 0 : index
      %c0_26 = arith.constant 0 : index
      %c0_27 = arith.constant 0 : index
      %29 = vector.load %arg7[%c0_25, %c0_26, %c0_27] : memref<2x128x64xf32, #tpu.memory_space<vmem>>, vector<1x128x64xf32>
      %30 = vector.shape_cast %29 : vector<1x128x64xf32> to vector<128x64xf32>
      %31 = vector.shape_cast %28 : vector<128x64xf32> to vector<1x128x64xf32>
      tpu.vector_store %arg7[%c0_25, %c0_26, %c0_27], %31 {strides = array<i32>} : memref<2x128x64xf32, #tpu.memory_space<vmem>>, vector<1x128x64xf32>,
      %c1_28 = arith.constant 1 : index
      %c0_29 = arith.constant 0 : index
      %c0_30 = arith.constant 0 : index
      %32 = vector.load %arg7[%c1_28, %c0_29, %c0_30] : memref<2x128x64xf32, #tpu.memory_space<vmem>>, vector<1x128x64xf32>
      %33 = vector.shape_cast %32 : vector<1x128x64xf32> to vector<128x64xf32>
      %34 = vector.shape_cast %28 : vector<128x64xf32> to vector<1x128x64xf32>
      tpu.vector_store %arg7[%c1_28, %c0_29, %c0_30], %34 {strides = array<i32>} : memref<2x128x64xf32, #tpu.memory_space<vmem>>, vector<1x128x64xf32>,
    } else {
    }
    %c0 = arith.constant 0 : index
    %c0_1 = arith.constant 0 : index
    %c0_2 = arith.constant 0 : index
    %3 = vector.load %arg2[%c0, %c0_1, %c0_2] : memref<2x128x64xf32, #tpu.memory_space<vmem>>, vector<1x128x64xf32>
    %4 = vector.shape_cast %3 : vector<1x128x64xf32> to vector<128x64xf32>
    %5 = arith.truncf %4 : vector<128x64xf32> to vector<128x64xbf16>
    %c0_3 = arith.constant 0 : index
    %c0_4 = arith.constant 0 : index
    %c0_5 = arith.constant 0 : index
    %6 = vector.load %arg7[%c0_3, %c0_4, %c0_5] : memref<2x128x64xf32, #tpu.memory_space<vmem>>, vector<1x128x64xf32>
    %7 = vector.shape_cast %6 : vector<1x128x64xf32> to vector<128x64xf32>
    %c0_6 = arith.constant 0 : index
    %c0_7 = arith.constant 0 : index
    %8 = vector.load %arg3[%c0_6, %c0_7] : memref<128x128xbf16, #tpu.memory_space<vmem>>, vector<128x128xbf16>
    %cst = arith.constant dense<0.000000e+00> : vector<128x64xf32>
    %9 = tpu.matmul %8, %5, %cst {dimension_numbers = #tpu.dot_dimension_numbers<[1], [0], [0], [1], [0, 0, 1, 1], [], []>} : vector<128x128xbf16>, vector<128x64xbf16>, vector<128x64xf32> -> vector<128x64xf32>
    %10 = arith.addf %7, %9 : vector<128x64xf32>
    %c0_8 = arith.constant 0 : index
    %c0_9 = arith.constant 0 : index
    %c0_10 = arith.constant 0 : index
    %11 = vector.load %arg7[%c0_8, %c0_9, %c0_10] : memref<2x128x64xf32, #tpu.memory_space<vmem>>, vector<1x128x64xf32>
    %12 = vector.shape_cast %11 : vector<1x128x64xf32> to vector<128x64xf32>
    %13 = vector.shape_cast %10 : vector<128x64xf32> to vector<1x128x64xf32>
    tpu.vector_store %arg7[%c0_8, %c0_9, %c0_10], %13 {strides = array<i32>} : memref<2x128x64xf32, #tpu.memory_space<vmem>>, vector<1x128x64xf32>,
    %c1 = arith.constant 1 : index
    %c0_11 = arith.constant 0 : index
    %c0_12 = arith.constant 0 : index
    %14 = vector.load %arg2[%c1, %c0_11, %c0_12] : memref<2x128x64xf32, #tpu.memory_space<vmem>>, vector<1x128x64xf32>
    %15 = vector.shape_cast %14 : vector<1x128x64xf32> to vector<128x64xf32>
    %16 = arith.truncf %15 : vector<128x64xf32> to vector<128x64xbf16>
    %c1_13 = arith.constant 1 : index
    %c0_14 = arith.constant 0 : index
    %c0_15 = arith.constant 0 : index
    %17 = vector.load %arg7[%c1_13, %c0_14, %c0_15] : memref<2x128x64xf32, #tpu.memory_space<vmem>>, vector<1x128x64xf32>
    %18 = vector.shape_cast %17 : vector<1x128x64xf32> to vector<128x64xf32>
    %c0_16 = arith.constant 0 : index
    %c0_17 = arith.constant 0 : index
    %19 = vector.load %arg3[%c0_16, %c0_17] : memref<128x128xbf16, #tpu.memory_space<vmem>>, vector<128x128xbf16>
    %cst_18 = arith.constant dense<0.000000e+00> : vector<128x64xf32>
    %20 = tpu.matmul %19, %16, %cst_18 {dimension_numbers = #tpu.dot_dimension_numbers<[1], [0], [0], [1], [0, 0, 1, 1], [], []>} : vector<128x128xbf16>, vector<128x64xbf16>, vector<128x64xf32> -> vector<128x64xf32>
    %21 = arith.addf %18, %20 : vector<128x64xf32>
    %c1_19 = arith.constant 1 : index
    %c0_20 = arith.constant 0 : index
    %c0_21 = arith.constant 0 : index
    %22 = vector.load %arg7[%c1_19, %c0_20, %c0_21] : memref<2x128x64xf32, #tpu.memory_space<vmem>>, vector<1x128x64xf32>
    %23 = vector.shape_cast %22 : vector<1x128x64xf32> to vector<128x64xf32>
    %24 = vector.shape_cast %21 : vector<128x64xf32> to vector<1x128x64xf32>
    tpu.vector_store %arg7[%c1_19, %c0_20, %c0_21], %24 {strides = array<i32>} : memref<2x128x64xf32, #tpu.memory_space<vmem>>, vector<1x128x64xf32>,
    %c1_i32 = arith.constant 1 : i32
    %25 = arith.cmpi eq, %arg1, %c1_i32 : i32
    %26 = arith.extui %25 : i1 to i32
    %c0_i32_22 = arith.constant 0 : i32
    %27 = arith.cmpi ne, %26, %c0_i32_22 : i32
    scf.if %27 {
      %c0_23 = arith.constant 0 : index
      %c0_24 = arith.constant 0 : index
      %28 = vector.load %arg5[%c0_23, %c0_24] : memref<128x1xf32, #tpu.memory_space<vmem>>, vector<128x1xf32>
      %c0_25 = arith.constant 0 : index
      %c0_26 = arith.constant 0 : index
      %29 = vector.load %arg6[%c0_25, %c0_26] : memref<128x1xf32, #tpu.memory_space<vmem>>, vector<128x1xf32>
      %c0_27 = arith.constant 0 : index
      %c0_28 = arith.constant 0 : index
      %c0_29 = arith.constant 0 : index
      %30 = vector.load %arg7[%c0_27, %c0_28, %c0_29] : memref<2x128x64xf32, #tpu.memory_space<vmem>>, vector<1x128x64xf32>
      %31 = vector.shape_cast %30 : vector<1x128x64xf32> to vector<128x64xf32>
      %32 = vector.shape_cast %31 : vector<128x64xf32> to vector<1x128x64xf32>
      %cst_30 = arith.constant dense<0.000000e+00> : vector<1xf32>
      %33 = vector.multi_reduction <add>, %32, %cst_30 [1, 2] : vector<1x128x64xf32> to vector<1xf32>
      %34 = vector.shape_cast %33 : vector<1xf32> to vector<1x1x1xf32>
      %35 = vector.extract %34[0, 0, 0] : f32 from vector<1x1x1xf32>
      %36 = vector.broadcast %35 : f32 to vector<1x1xf32>
      %cst_31 = arith.constant 1.22070313E-4 : f32
      %37 = vector.broadcast %cst_31 : f32 to vector<1x1xf32>
      %38 = arith.mulf %36, %37 : vector<1x1xf32>
      %39 = vector.broadcast %38 : vector<1x1xf32> to vector<128x64xf32>
      %40 = arith.subf %31, %39 : vector<128x64xf32>
      %41 = arith.mulf %40, %40 : vector<128x64xf32>
      %42 = vector.shape_cast %41 : vector<128x64xf32> to vector<1x128x64xf32>
      %cst_32 = arith.constant dense<0.000000e+00> : vector<1xf32>
      %43 = vector.multi_reduction <add>, %42, %cst_32 [1, 2] : vector<1x128x64xf32> to vector<1xf32>
      %44 = vector.shape_cast %43 : vector<1xf32> to vector<1x1x1xf32>
      %45 = vector.extract %44[0, 0, 0] : f32 from vector<1x1x1xf32>
      %46 = vector.broadcast %45 : f32 to vector<1x1xf32>
      %cst_33 = arith.constant 1.22070313E-4 : f32
      %47 = vector.broadcast %cst_33 : f32 to vector<1x1xf32>
      %48 = arith.mulf %46, %47 : vector<1x1xf32>
      %cst_34 = arith.constant 9.99999974E-6 : f32
      %49 = vector.broadcast %cst_34 : f32 to vector<1x1xf32>
      %50 = arith.addf %48, %49 : vector<1x1xf32>
      %51 = math.rsqrt %50 : vector<1x1xf32>
      %52 = vector.broadcast %51 : vector<1x1xf32> to vector<128x64xf32>
      %53 = arith.mulf %40, %52 : vector<128x64xf32>
      %54 = vector.broadcast %28 : vector<128x1xf32> to vector<128x64xf32>
      %55 = arith.mulf %53, %54 : vector<128x64xf32>
      %56 = vector.broadcast %29 : vector<128x1xf32> to vector<128x64xf32>
      %57 = arith.addf %55, %56 : vector<128x64xf32>
      %c0_35 = arith.constant 0 : index
      %c0_36 = arith.constant 0 : index
      %c0_37 = arith.constant 0 : index
      %58 = vector.load %arg7[%c0_35, %c0_36, %c0_37] : memref<2x128x64xf32, #tpu.memory_space<vmem>>, vector<1x128x64xf32>
      %59 = vector.shape_cast %58 : vector<1x128x64xf32> to vector<128x64xf32>
      %60 = vector.shape_cast %57 : vector<128x64xf32> to vector<1x128x64xf32>
      tpu.vector_store %arg7[%c0_35, %c0_36, %c0_37], %60 {strides = array<i32>} : memref<2x128x64xf32, #tpu.memory_space<vmem>>, vector<1x128x64xf32>,
      %c1_38 = arith.constant 1 : index
      %c0_39 = arith.constant 0 : index
      %c0_40 = arith.constant 0 : index
      %61 = vector.load %arg7[%c1_38, %c0_39, %c0_40] : memref<2x128x64xf32, #tpu.memory_space<vmem>>, vector<1x128x64xf32>
      %62 = vector.shape_cast %61 : vector<1x128x64xf32> to vector<128x64xf32>
      %63 = vector.shape_cast %62 : vector<128x64xf32> to vector<1x128x64xf32>
      %cst_41 = arith.constant dense<0.000000e+00> : vector<1xf32>
      %64 = vector.multi_reduction <add>, %63, %cst_41 [1, 2] : vector<1x128x64xf32> to vector<1xf32>
      %65 = vector.shape_cast %64 : vector<1xf32> to vector<1x1x1xf32>
      %66 = vector.extract %65[0, 0, 0] : f32 from vector<1x1x1xf32>
      %67 = vector.broadcast %66 : f32 to vector<1x1xf32>
      %cst_42 = arith.constant 1.22070313E-4 : f32
      %68 = vector.broadcast %cst_42 : f32 to vector<1x1xf32>
      %69 = arith.mulf %67, %68 : vector<1x1xf32>
      %70 = vector.broadcast %69 : vector<1x1xf32> to vector<128x64xf32>
      %71 = arith.subf %62, %70 : vector<128x64xf32>
      %72 = arith.mulf %71, %71 : vector<128x64xf32>
      %73 = vector.shape_cast %72 : vector<128x64xf32> to vector<1x128x64xf32>
      %cst_43 = arith.constant dense<0.000000e+00> : vector<1xf32>
      %74 = vector.multi_reduction <add>, %73, %cst_43 [1, 2] : vector<1x128x64xf32> to vector<1xf32>
      %75 = vector.shape_cast %74 : vector<1xf32> to vector<1x1x1xf32>
      %76 = vector.extract %75[0, 0, 0] : f32 from vector<1x1x1xf32>
      %77 = vector.broadcast %76 : f32 to vector<1x1xf32>
      %cst_44 = arith.constant 1.22070313E-4 : f32
      %78 = vector.broadcast %cst_44 : f32 to vector<1x1xf32>
      %79 = arith.mulf %77, %78 : vector<1x1xf32>
      %cst_45 = arith.constant 9.99999974E-6 : f32
      %80 = vector.broadcast %cst_45 : f32 to vector<1x1xf32>
      %81 = arith.addf %79, %80 : vector<1x1xf32>
      %82 = math.rsqrt %81 : vector<1x1xf32>
      %83 = vector.broadcast %82 : vector<1x1xf32> to vector<128x64xf32>
      %84 = arith.mulf %71, %83 : vector<128x64xf32>
      %85 = vector.broadcast %28 : vector<128x1xf32> to vector<128x64xf32>
      %86 = arith.mulf %84, %85 : vector<128x64xf32>
      %87 = vector.broadcast %29 : vector<128x1xf32> to vector<128x64xf32>
      %88 = arith.addf %86, %87 : vector<128x64xf32>
      %c1_46 = arith.constant 1 : index
      %c0_47 = arith.constant 0 : index
      %c0_48 = arith.constant 0 : index
      %89 = vector.load %arg7[%c1_46, %c0_47, %c0_48] : memref<2x128x64xf32, #tpu.memory_space<vmem>>, vector<1x128x64xf32>
      %90 = vector.shape_cast %89 : vector<1x128x64xf32> to vector<128x64xf32>
      %91 = vector.shape_cast %88 : vector<128x64xf32> to vector<1x128x64xf32>
      tpu.vector_store %arg7[%c1_46, %c0_47, %c0_48], %91 {strides = array<i32>} : memref<2x128x64xf32, #tpu.memory_space<vmem>>, vector<1x128x64xf32>,
    } else {
    }
    return
  }
  func.func @transform_0(%arg0: i32, %arg1: i32) -> (i32, i32, i32) {
    %c0_i32 = arith.constant 0 : i32
    %c0_i32_0 = arith.constant 0 : i32
    return %arg0, %arg1, %c0_i32 : i32, i32, i32
  }
  func.func @transform_1(%arg0: i32, %arg1: i32) -> (i32, i32) {
    %c0_i32 = arith.constant 0 : i32
    %c0_i32_0 = arith.constant 0 : i32
    return %c0_i32, %arg1 : i32, i32
  }
  func.func @transform_2(%arg0: i32, %arg1: i32) -> (i32, i32) {
    %c0_i32 = arith.constant 0 : i32
    %c0_i32_0 = arith.constant 0 : i32
    %c0_i32_1 = arith.constant 0 : i32
    return %c0_i32, %c0_i32_0 : i32, i32
  }
  func.func @transform_3(%arg0: i32, %arg1: i32) -> (i32, i32) {
    %c0_i32 = arith.constant 0 : i32
    %c0_i32_0 = arith.constant 0 : i32
    %c0_i32_1 = arith.constant 0 : i32
    return %c0_i32, %c0_i32_0 : i32, i32
  }
  func.func @transform_4(%arg0: i32, %arg1: i32) -> (i32, i32) {
    %c0_i32 = arith.constant 0 : i32
    %c0_i32_0 = arith.constant 0 : i32
    %c0_i32_1 = arith.constant 0 : i32
    return %c0_i32, %c0_i32_0 : i32, i32
  }
  func.func @transform_5(%arg0: i32, %arg1: i32) -> (i32, i32, i32) {
    %c0_i32 = arith.constant 0 : i32
    %c0_i32_0 = arith.constant 0 : i32
    %c0_i32_1 = arith.constant 0 : i32
    return %arg0, %c0_i32, %c0_i32_0 : i32, i32, i32
  }
}

</mosaic_0001>

<bundles_post_ra>
// kernel: tpu_custom_call.1
= control target key start
LH: loop header
LB: loop body
LE: loop exit
PB: predicated region body
PF: predicated region fallthrough
CT: control target
= control target key end

     0   :  { %s2070_s18 = smov 0   ;;  %s2072_s19 = smov 0   ;;  %s3188_s0 = inlined_call_operand.vmem [shape: f32[4,256,64], index: 0, kind: input, shape index: {}]   ;;  %s3189_s1 = inlined_call_operand.vmem [shape: bf16[128,256], index: 1, kind: input, shape index: {}]   ;;  %s3190_s2 = inlined_call_operand.vmem [shape: f32[128,64], index: 2, kind: input, shape index: {}]   ;;  %s3191_s3 = inlined_call_operand.vmem [shape: f32[128,1], index: 3, kind: input, shape index: {}]   ;;  %s3192_s4 = inlined_call_operand.vmem [shape: f32[128,1], index: 4, kind: input, shape index: {}]   ;;  %s3193_s5 = inlined_call_operand.vmem [shape: f32[4,128,64], index: 5, kind: output, shape index: {}]  }
   0x1   :  { %s2074_s20 = smov 0   ;;  %s2076_s21 = smov 0  }
   0x2   :  { %s2078_s22 = smov 0   ;;  %s2080_s23 = smov 0  }
   0x3   :  { %s2082_s24 = smov 0   ;;  %s2084_s25 = smov 0  }
   0x4   :  { %s2086_s26 = smov 0  }
   0x5 LB: > { %s24_s27 = sadd.s32 1, %s2029_s24  ;;  %s27_s28 = sadd.s32 1, %s2033_s25  ;;  %s2037_s26 = sphi %s2086_s26, %s15_s26   ;;  %s2033_s25 = sphi %s2084_s25, %s3212_s25   ;;  %s2029_s24 = sphi %s2082_s24, %s3211_s24   ;;  %s2025_s23 = sphi %s2080_s23, %s3210_s23   ;;  %s2021_s22 = sphi %s2078_s22, %s3209_s22   ;;  %s2017_s21 = sphi %s2076_s21, %s3208_s21   ;;  %s2013_s20 = sphi %s2074_s20, %s3207_s20   ;;  %s2009_s19 = sphi %s2072_s19, %s3206_s19   ;;  %s2005_s18 = sphi %s2070_s18, %s3205_s18  }
   0x6   : > { %p25_p0 = scmp.ge.s32.totalorder %s24_s27, 2  ;;  %p43_p1 = scmp.ne.s32.totalorder %s2017_s21, %s2013_s20 }
   0x7   : > { %p44_p2 = scmp.eq.s32.totalorder %s2037_s26, 0  ;;  %s62_s6 = sadd.s32 1, %s2009_s19 }
   0x8   : > { %s3214_s27 = smov (%p25_p0, %s24_s27), 0  ;;  %s3216_s28 = smov (!%p25_p0, %s27_s28), %s2033_s25 }
   0x9   : > { %s32_s29 = ssub.s32 %s2029_s24, %s3214_s27  ;;  %p2125_p3 = por %p44_p2, %p43_p1 }
   0xa   : > { %p29_p4 = scmp.ge.s32.totalorder %s3216_s28, 2  ;;  %p60_p5 = scmp.eq.s32.totalorder %s32_s29, 0 }
   0xb   : > { %p69_p6 = scmp.ne.s32.totalorder %s2009_s19, %s2005_s18  ;;  %s36_s11 = sadd.s32 1, %s2017_s21 }
   0xc   : > { %s3218_s28 = smov (%p29_p4, %s3216_s28), 0  ;;  %p1667_p9 = scmp.ge.s32.totalorder %s2037_s26, 4 }
   0xd   : > { %s2135_s7 = scalar_select %p60_p5, %s2009_s19, %s62_s6  }
   0xe   : > { %s31_s8 = ssub.s32 %s2033_s25, %s3218_s28  ;;  %p2139_p7 = por %p69_p6, %p44_p2 }
   0xf   : > { %s33_s10 = sor.u32 %s32_s29, %s31_s8  ;;  %193 = sbr.rel (%p1667_p9) target bundleno = 79 (0x4f), region = 28 }
  0x10   : > { %p34_p8 = scmp.eq.s32.totalorder %s33_s10, 0 }
  0x12   : > { %s2145_s12 = scalar_select %p34_p8, %s2017_s21, %s36_s11  }
  0x14   : > { %196 = sbr.rel (!%p2125_p3) target bundleno = 59 (0x3b), region = 32  ;;  %s198_s13 = sand.u32 (%p2125_p3), 1, %s2017_s21  }
  0x15   : > { %s1670_s14 = sshll.u32 (%p2125_p3), %s2029_s24, 4  ;;  %s1668_s15 = sshll.u32 (%p2125_p3), %s198_s13, 8 }
  0x16   : > { %s1845_s16 = sshll.u32 (%p2125_p3), %s2033_s25, 6  ;;  %s2161_s30 = scalar_lea.vmem (%p2125_p3), [#allocation2], %s1668_s15 }
  0x17   : > { %s204_s17 = sadd.s32 (%p2125_p3), %s1845_s16, %s1670_s14 }
  0x18   : > { %s1672_s6 = sshll.u32 (%p2125_p3), %s204_s17, 3 }
  0x19   : > { %s2156_s10 = scalar_lea.vmem %s3188_s0, %s1672_s6 }
  0x1a   : > { %v297_v0 = vld [vmem:[%s2156_s10] sm:$0xff]  ;;  %v299_v1 = vld [vmem:[%s2156_s10 + $0x8] sm:$0xff]  ;;  %v301_v2 = vld [vmem:[%s2156_s10 + $0x10] sm:$0xff] }
  0x1b   : > { %298 = vst [vmem:[%s2161_s30] sm:$0xff] %v297_v0  ;;  %v303_v3 = vld [vmem:[%s2156_s10 + $0x18] sm:$0xff]  ;;  %v305_v4 = vld [vmem:[%s2156_s10 + $0x20] sm:$0xff]  ;;  %v307_v5 = vld [vmem:[%s2156_s10 + $0x28] sm:$0xff] }
  0x1c   : > { %300 = vst [vmem:[%s2161_s30 + $0x8] sm:$0xff] %v299_v1  ;;  %v309_v6 = vld [vmem:[%s2156_s10 + $0x30] sm:$0xff]  ;;  %v311_v7 = vld [vmem:[%s2156_s10 + $0x38] sm:$0xff]  ;;  %v313_v8 = vld [vmem:[%s2156_s10 + $0x40] sm:$0xff] }
  0x1d   : > { %302 = vst [vmem:[%s2161_s30 + $0x10] sm:$0xff] %v301_v2  ;;  %v315_v9 = vld [vmem:[%s2156_s10 + $0x48] sm:$0xff]  ;;  %v317_v10 = vld [vmem:[%s2156_s10 + $0x50] sm:$0xff]  ;;  %v319_v11 = vld [vmem:[%s2156_s10 + $0x58] sm:$0xff] }
  0x1e   : > { %304 = vst [vmem:[%s2161_s30 + $0x18] sm:$0xff] %v303_v3  ;;  %v321_v12 = vld [vmem:[%s2156_s10 + $0x60] sm:$0xff]  ;;  %v323_v13 = vld [vmem:[%s2156_s10 + $0x68] sm:$0xff]  ;;  %v325_v14 = vld [vmem:[%s2156_s10 + $0x70] sm:$0xff] }
  0x1f   : > { %306 = vst [vmem:[%s2161_s30 + $0x20] sm:$0xff] %v305_v4  ;;  %v327_v15 = vld [vmem:[%s2156_s10 + $0x78] sm:$0xff]  ;;  %v329_v16 = vld [vmem:[%s2156_s10 + $0x100] sm:$0xff]  ;;  %v331_v17 = vld [vmem:[%s2156_s10 + $0x108] sm:$0xff] }
  0x20   : > { %308 = vst [vmem:[%s2161_s30 + $0x28] sm:$0xff] %v307_v5  ;;  %v333_v18 = vld [vmem:[%s2156_s10 + $0x110] sm:$0xff]  ;;  %v335_v19 = vld [vmem:[%s2156_s10 + $0x118] sm:$0xff]  ;;  %v337_v20 = vld [vmem:[%s2156_s10 + $0x120] sm:$0xff] }
  0x21   : > { %310 = vst [vmem:[%s2161_s30 + $0x30] sm:$0xff] %v309_v6  ;;  %v339_v21 = vld [vmem:[%s2156_s10 + $0x128] sm:$0xff]  ;;  %v341_v22 = vld [vmem:[%s2156_s10 + $0x130] sm:$0xff]  ;;  %v343_v23 = vld [vmem:[%s2156_s10 + $0x138] sm:$0xff] }
  0x22   : > { %312 = vst [vmem:[%s2161_s30 + $0x38] sm:$0xff] %v311_v7  ;;  %v345_v24 = vld [vmem:[%s2156_s10 + $0x140] sm:$0xff]  ;;  %v347_v25 = vld [vmem:[%s2156_s10 + $0x148] sm:$0xff]  ;;  %v349_v26 = vld [vmem:[%s2156_s10 + $0x150] sm:$0xff] }
  0x23   : > { %314 = vst [vmem:[%s2161_s30 + $0x40] sm:$0xff] %v313_v8  ;;  %v351_v27 = vld [vmem:[%s2156_s10 + $0x158] sm:$0xff]  ;;  %v353_v28 = vld [vmem:[%s2156_s10 + $0x160] sm:$0xff]  ;;  %v355_v29 = vld [vmem:[%s2156_s10 + $0x168] sm:$0xff] }
  0x24   : > { %316 = vst [vmem:[%s2161_s30 + $0x48] sm:$0xff] %v315_v9  ;;  %v357_v30 = vld [vmem:[%s2156_s10 + $0x170] sm:$0xff]  ;;  %v359_v31 = vld [vmem:[%s2156_s10 + $0x178] sm:$0xff] }
  0x25   : > { %318 = vst [vmem:[%s2161_s30 + $0x50] sm:$0xff] %v317_v10 }
  0x26   : > { %320 = vst [vmem:[%s2161_s30 + $0x58] sm:$0xff] %v319_v11 }
  0x27   : > { %322 = vst [vmem:[%s2161_s30 + $0x60] sm:$0xff] %v321_v12 }
  0x28   : > { %324 = vst [vmem:[%s2161_s30 + $0x68] sm:$0xff] %v323_v13 }
  0x29   : > { %326 = vst [vmem:[%s2161_s30 + $0x70] sm:$0xff] %v325_v14 }
  0x2a   : > { %328 = vst [vmem:[%s2161_s30 + $0x78] sm:$0xff] %v327_v15 }
  0x2b   : > { %330 = vst [vmem:[%s2161_s30 + $0x80] sm:$0xff] %v329_v16 }
  0x2c   : > { %332 = vst [vmem:[%s2161_s30 + $0x88] sm:$0xff] %v331_v17 }
  0x2d   : > { %334 = vst [vmem:[%s2161_s30 + $0x90] sm:$0xff] %v333_v18 }
  0x2e   : > { %336 = vst [vmem:[%s2161_s30 + $0x98] sm:$0xff] %v335_v19 }
  0x2f   : > { %338 = vst [vmem:[%s2161_s30 + $0xa0] sm:$0xff] %v337_v20 }
  0x30   : > { %340 = vst [vmem:[%s2161_s30 + $0xa8] sm:$0xff] %v339_v21 }
  0x31   : > { %342 = vst [vmem:[%s2161_s30 + $0xb0] sm:$0xff] %v341_v22 }
  0x32   : > { %344 = vst [vmem:[%s2161_s30 + $0xb8] sm:$0xff] %v343_v23 }
  0x33   : > { %346 = vst [vmem:[%s2161_s30 + $0xc0] sm:$0xff] %v345_v24 }
  0x34   : > { %348 = vst [vmem:[%s2161_s30 + $0xc8] sm:$0xff] %v347_v25 }
  0x35   : > { %350 = vst [vmem:[%s2161_s30 + $0xd0] sm:$0xff] %v349_v26 }
  0x36   : > { %352 = vst [vmem:[%s2161_s30 + $0xd8] sm:$0xff] %v351_v27 }
  0x37   : > { %354 = vst [vmem:[%s2161_s30 + $0xe0] sm:$0xff] %v353_v28 }
  0x38   : > { %356 = vst [vmem:[%s2161_s30 + $0xe8] sm:$0xff] %v355_v29 }
  0x39   : > { %358 = vst [vmem:[%s2161_s30 + $0xf0] sm:$0xff] %v357_v30 }
  0x3a   : > { %360 = vst [vmem:[%s2161_s30 + $0xf8] sm:$0xff] %v359_v31 }
  0x3b PF: > { %366 = sbr.rel (!%p2139_p7) target bundleno = 79 (0x4f), region = 70  ;;  %s368_s11 = sand.u32 (%p2139_p7), 1, %s2009_s19  }
  0x3c   : > { %s1674_s13 = sshll.u32 (%p2139_p7), %s2029_s24, 2  ;;  %s1673_s14 = sshll.u32 (%p2139_p7), %s368_s11, 6 }
  0x3d   : > { %s2231_s17 = scalar_lea.vmem (%p2139_p7), %s3189_s1, %s1674_s13  ;;  %s370_s9 = scalar_lea.vmem (%p2139_p7), [#allocation3], %s1673_s14 }
  0x3e   : > { %v389_v32 = vld [vmem:[%s2231_s17] sm:$0xf] (%p2139_p7)  ;;  %v391_v33 = vld [vmem:[%s2231_s17 + $0x8] sm:$0xf] (%p2139_p7)  ;;  %v393_v34 = vld [vmem:[%s2231_s17 + $0x10] sm:$0xf] (%p2139_p7) }
  0x3f   : > { %390 = vst [vmem:[%s370_s9] sm:$0xf] (%p2139_p7), %v389_v32  ;;  %v395_v35 = vld [vmem:[%s2231_s17 + $0x18] sm:$0xf] (%p2139_p7)  ;;  %v397_v36 = vld [vmem:[%s2231_s17 + $0x20] sm:$0xf] (%p2139_p7) }
  0x40   : > { %392 = vst [vmem:[%s370_s9 + $0x4] sm:$0xf] %v391_v33  ;;  %v399_v37 = vld [vmem:[%s2231_s17 + $0x28] sm:$0xf]  ;;  %v401_v38 = vld [vmem:[%s2231_s17 + $0x30] sm:$0xf] }
  0x41   : > { %394 = vst [vmem:[%s370_s9 + $0x8] sm:$0xf] %v393_v34  ;;  %v403_v39 = vld [vmem:[%s2231_s17 + $0x38] sm:$0xf]  ;;  %v405_v40 = vld [vmem:[%s2231_s17 + $0x40] sm:$0xf] }
  0x42   : > { %396 = vst [vmem:[%s370_s9 + $0xc] sm:$0xf] %v395_v35  ;;  %v407_v41 = vld [vmem:[%s2231_s17 + $0x48] sm:$0xf]  ;;  %v409_v42 = vld [vmem:[%s2231_s17 + $0x50] sm:$0xf] }
  0x43   : > { %398 = vst [vmem:[%s370_s9 + $0x10] sm:$0xf] %v397_v36  ;;  %v411_v43 = vld [vmem:[%s2231_s17 + $0x58] sm:$0xf]  ;;  %v413_v44 = vld [vmem:[%s2231_s17 + $0x60] sm:$0xf] }
  0x44   : > { %400 = vst [vmem:[%s370_s9 + $0x14] sm:$0xf] %v399_v37  ;;  %v415_v45 = vld [vmem:[%s2231_s17 + $0x68] sm:$0xf]  ;;  %v417_v46 = vld [vmem:[%s2231_s17 + $0x70] sm:$0xf] }
  0x45   : > { %402 = vst [vmem:[%s370_s9 + $0x18] sm:$0xf] %v401_v38  ;;  %v419_v47 = vld [vmem:[%s2231_s17 + $0x78] sm:$0xf] }
  0x46   : > { %404 = vst [vmem:[%s370_s9 + $0x1c] sm:$0xf] %v403_v39 }
  0x47   : > { %406 = vst [vmem:[%s370_s9 + $0x20] sm:$0xf] %v405_v40 }
  0x48   : > { %408 = vst [vmem:[%s370_s9 + $0x24] sm:$0xf] %v407_v41 }
  0x49   : > { %410 = vst [vmem:[%s370_s9 + $0x28] sm:$0xf] %v409_v42 }
  0x4a   : > { %412 = vst [vmem:[%s370_s9 + $0x2c] sm:$0xf] %v411_v43 }
  0x4b   : > { %414 = vst [vmem:[%s370_s9 + $0x30] sm:$0xf] %v413_v44 }
  0x4c   : > { %416 = vst [vmem:[%s370_s9 + $0x34] sm:$0xf] %v415_v45 }
  0x4d   : > { %418 = vst [vmem:[%s370_s9 + $0x38] sm:$0xf] %v417_v46 }
  0x4e   : > { %420 = vst [vmem:[%s370_s9 + $0x3c] sm:$0xf] %v419_v47 }
  0x4f PF: > { %p1675_p10 = scmp.ge.s32.totalorder %s2037_s26, 1  ;;  %p475_p11 = scmp.lt.s32.totalorder %s2037_s26, 5 }
  0x51   : > { %p476_p12 = pnand %p1675_p10, %p475_p11 }
  0x52   : > { %s482_s6 = sand.u32 (!%p476_p12), 1, %s2013_s20   ;;  %s489_s29 = sand.u32 (!%p476_p12), 1, %s2005_s18  }
  0x53   : > { %479 = sbr.rel (%p476_p12) target bundleno = 1282 (0x502), region = 111  ;;  %s1676_s8 = sshll.u32 (!%p476_p12), %s482_s6, 8 }
  0x54   : > { %s1677_s10 = sshll.u32 (!%p476_p12), %s489_s29, 6  ;;  %s1678_s30 = sshll.u32 (!%p476_p12), %s2025_s23, 1 }
  0x55   : > { %p524_p13 = scmp.lt.s32.totalorder (!%p476_p12), %s1678_s30, 3  ;;  %s2259_s16 = scalar_lea.vmem (!%p476_p12), [#allocation2], %s1676_s8 }
  0x56   : > { %s2261_s17 = scalar_lea.vmem (!%p476_p12), [#allocation3], %s1677_s10  ;;  %p1681_p0 = scmp.ne.s32.totalorder (!%p476_p12), %s2021_s22, 0 }
  0x58   : > { %s3220_s30 = smov (!%p524_p13, %s1678_s30), 3  ;;  %533 = sbr.rel (%p1681_p0) target bundleno = 126 (0x7e), region = 123 }
  0x59   : > { %s1846_s11 = sshll.u32 %s3220_s30, 7 }
  0x5a   : > { %s2257_s15 = scalar_lea.vmem %s3193_s5, %s1846_s11 }
  0x5d   : > { %v534_v48 = vld [vmem:[%s3190_s2] sm:$0xff]  ;;  %vm550_vm0 = vcmask 523264   ;;  %v535_v49 = vld [vmem:[%s3190_s2 + $0x8] sm:$0xff]  ;;  %v536_v50 = vld [vmem:[%s3190_s2 + $0x10] sm:$0xff] }
  0x5e   : > { %551 = vst.msk [vmem:[%s2257_s15] sm:$0xff] %vm550_vm0, %v534_v48  ;;  %v537_v51 = vld [vmem:[%s3190_s2 + $0x18] sm:$0xff]  ;;  %v538_v52 = vld [vmem:[%s3190_s2 + $0x20] sm:$0xff]  ;;  %v539_v53 = vld [vmem:[%s3190_s2 + $0x28] sm:$0xff] }
  0x5f   : > { %1682 = vst.msk [vmem:[%s2257_s15 + $0x80] sm:$0xff] %vm550_vm0, %v534_v48  ;;  %v540_v54 = vld [vmem:[%s3190_s2 + $0x30] sm:$0xff]  ;;  %v541_v55 = vld [vmem:[%s3190_s2 + $0x38] sm:$0xff]  ;;  %v542_v56 = vld [vmem:[%s3190_s2 + $0x40] sm:$0xff] }
  0x60   : > { %552 = vst.msk [vmem:[%s2257_s15 + $0x8] sm:$0xff] %vm550_vm0, %v535_v49  ;;  %v543_v57 = vld [vmem:[%s3190_s2 + $0x48] sm:$0xff]  ;;  %v544_v58 = vld [vmem:[%s3190_s2 + $0x50] sm:$0xff]  ;;  %v545_v59 = vld [vmem:[%s3190_s2 + $0x58] sm:$0xff] }
  0x61   : > { %1683 = vst.msk [vmem:[%s2257_s15 + $0x88] sm:$0xff] %vm550_vm0, %v535_v49  ;;  %v546_v60 = vld [vmem:[%s3190_s2 + $0x60] sm:$0xff]  ;;  %v547_v61 = vld [vmem:[%s3190_s2 + $0x68] sm:$0xff]  ;;  %v548_v62 = vld [vmem:[%s3190_s2 + $0x70] sm:$0xff] }
  0x62   : > { %553 = vst.msk [vmem:[%s2257_s15 + $0x10] sm:$0xff] %vm550_vm0, %v536_v50  ;;  %v549_v63 = vld [vmem:[%s3190_s2 + $0x78] sm:$0xff] }
  0x63   : > { %1684 = vst.msk [vmem:[%s2257_s15 + $0x90] sm:$0xff] %vm550_vm0, %v536_v50 }
  0x64   : > { %554 = vst.msk [vmem:[%s2257_s15 + $0x18] sm:$0xff] %vm550_vm0, %v537_v51 }
  0x65   : > { %1685 = vst.msk [vmem:[%s2257_s15 + $0x98] sm:$0xff] %vm550_vm0, %v537_v51 }
  0x66   : > { %555 = vst.msk [vmem:[%s2257_s15 + $0x20] sm:$0xff] %vm550_vm0, %v538_v52 }
  0x67   : > { %1686 = vst.msk [vmem:[%s2257_s15 + $0xa0] sm:$0xff] %vm550_vm0, %v538_v52 }
  0x68   : > { %556 = vst.msk [vmem:[%s2257_s15 + $0x28] sm:$0xff] %vm550_vm0, %v539_v53 }
  0x69   : > { %1687 = vst.msk [vmem:[%s2257_s15 + $0xa8] sm:$0xff] %vm550_vm0, %v539_v53 }
  0x6a   : > { %557 = vst.msk [vmem:[%s2257_s15 + $0x30] sm:$0xff] %vm550_vm0, %v540_v54 }
  0x6b   : > { %1688 = vst.msk [vmem:[%s2257_s15 + $0xb0] sm:$0xff] %vm550_vm0, %v540_v54 }
  0x6c   : > { %558 = vst.msk [vmem:[%s2257_s15 + $0x38] sm:$0xff] %vm550_vm0, %v541_v55 }
  0x6d   : > { %1689 = vst.msk [vmem:[%s2257_s15 + $0xb8] sm:$0xff] %vm550_vm0, %v541_v55 }
  0x6e   : > { %559 = vst.msk [vmem:[%s2257_s15 + $0x40] sm:$0xff] %vm550_vm0, %v542_v56 }
  0x6f   : > { %1690 = vst.msk [vmem:[%s2257_s15 + $0xc0] sm:$0xff] %vm550_vm0, %v542_v56 }
  0x70   : > { %560 = vst.msk [vmem:[%s2257_s15 + $0x48] sm:$0xff] %vm550_vm0, %v543_v57 }
  0x71   : > { %1691 = vst.msk [vmem:[%s2257_s15 + $0xc8] sm:$0xff] %vm550_vm0, %v543_v57 }
  0x72   : > { %561 = vst.msk [vmem:[%s2257_s15 + $0x50] sm:$0xff] %vm550_vm0, %v544_v58 }
  0x73   : > { %1692 = vst.msk [vmem:[%s2257_s15 + $0xd0] sm:$0xff] %vm550_vm0, %v544_v58 }
  0x74   : > { %562 = vst.msk [vmem:[%s2257_s15 + $0x58] sm:$0xff] %vm550_vm0, %v545_v59 }
  0x75   : > { %1693 = vst.msk [vmem:[%s2257_s15 + $0xd8] sm:$0xff] %vm550_vm0, %v545_v59 }
  0x76   : > { %563 = vst.msk [vmem:[%s2257_s15 + $0x60] sm:$0xff] %vm550_vm0, %v546_v60 }
  0x77   : > { %1694 = vst.msk [vmem:[%s2257_s15 + $0xe0] sm:$0xff] %vm550_vm0, %v546_v60 }
  0x78   : > { %564 = vst.msk [vmem:[%s2257_s15 + $0x68] sm:$0xff] %vm550_vm0, %v547_v61 }
  0x79   : > { %1695 = vst.msk [vmem:[%s2257_s15 + $0xe8] sm:$0xff] %vm550_vm0, %v547_v61 }
  0x7a   : > { %565 = vst.msk [vmem:[%s2257_s15 + $0x70] sm:$0xff] %vm550_vm0, %v548_v62 }
  0x7b   : > { %1696 = vst.msk [vmem:[%s2257_s15 + $0xf0] sm:$0xff] %vm550_vm0, %v548_v62 }
  0x7c   : > { %566 = vst.msk [vmem:[%s2257_s15 + $0x78] sm:$0xff] %vm550_vm0, %v549_v63 }
  0x7d   : > { %1697 = vst.msk [vmem:[%s2257_s15 + $0xf8] sm:$0xff] %vm550_vm0, %v549_v63 }
  0x7e PF: > { %v598_v0 = vld [vmem:[%s2259_s16 + $0x70] sm:$0xff]  ;;  %v599_v1 = vld [vmem:[%s2259_s16 + $0x78] sm:$0xff]  ;;  %v596_v5 = vld [vmem:[%s2259_s16 + $0x60] sm:$0xff]  ;;  %vm753_vm1 = vcmask 523264   ;;  %p1810_p1 = scmp.ne.s32.totalorder %s2021_s22, 1 }
  0x7f   : > { %v1744_v2 = vld [vmem:[%s2259_s16 + $0xf0] sm:$0xff]  ;;  %v607_v3 = vpack.c.bf16 %v599_v1, %v598_v0  ;;  %v1745_v4 = vld [vmem:[%s2259_s16 + $0xf8] sm:$0xff]  ;;  %v597_v6 = vld [vmem:[%s2259_s16 + $0x68] sm:$0xff] }
  0x80   : > { %v794_v7 = vpack.c.bf16 %v1745_v4, %v1744_v2  ;;  %v1742_v8 = vld [vmem:[%s2259_s16 + $0xe0] sm:$0xff]  ;;  %v1743_v9 = vld [vmem:[%s2259_s16 + $0xe8] sm:$0xff]  ;;  %v606_v10 = vpack.c.bf16 %v597_v6, %v596_v5  ;;  %v594_v12 = vld [vmem:[%s2259_s16 + $0x50] sm:$0xff] }
  0x81   : > { %688 = vmatpush.bf16.msra.mxu0 %v607_v3  ;;  %1863 = vmatpush.bf16.msra.mxu2 %v607_v3  ;;  %v793_v11 = vpack.c.bf16 %v1743_v9, %v1742_v8  ;;  %v595_v13 = vld [vmem:[%s2259_s16 + $0x58] sm:$0xff]  ;;  %v1740_v14 = vld [vmem:[%s2259_s16 + $0xd0] sm:$0xff]  ;;  %v592_v18 = vld [vmem:[%s2259_s16 + $0x40] sm:$0xff] }
  0x82   : > { %1871 = vmatpush.bf16.msra.mxu3 %v794_v7  ;;  %876 = vmatpush.bf16.msra.mxu1 %v794_v7  ;;  %v1741_v15 = vld [vmem:[%s2259_s16 + $0xd8] sm:$0xff]  ;;  %v605_v16 = vpack.c.bf16 %v595_v13, %v594_v12  ;;  %v593_v19 = vld [vmem:[%s2259_s16 + $0x48] sm:$0xff]  ;;  %v1738_v20 = vld [vmem:[%s2259_s16 + $0xc0] sm:$0xff] }
  0x83   : > { %v792_v17 = vpack.c.bf16 %v1741_v15, %v1740_v14  ;;  %v1739_v21 = vld [vmem:[%s2259_s16 + $0xc8] sm:$0xff]  ;;  %v604_v22 = vpack.c.bf16 %v593_v19, %v592_v18  ;;  %v590_v24 = vld [vmem:[%s2259_s16 + $0x30] sm:$0xff]  ;;  %v591_v25 = vld [vmem:[%s2259_s16 + $0x38] sm:$0xff] }
  0x84   : > { %v791_v23 = vpack.c.bf16 %v1739_v21, %v1738_v20  ;;  %v1736_v26 = vld [vmem:[%s2259_s16 + $0xb0] sm:$0xff]  ;;  %v1737_v27 = vld [vmem:[%s2259_s16 + $0xb8] sm:$0xff]  ;;  %v603_v28 = vpack.c.bf16 %v591_v25, %v590_v24  ;;  %v588_v30 = vld [vmem:[%s2259_s16 + $0x20] sm:$0xff] }
  0x85   : > { %689 = vmatpush.bf16.msra.mxu0 %v606_v10  ;;  %1864 = vmatpush.bf16.msra.mxu2 %v606_v10  ;;  %v790_v29 = vpack.c.bf16 %v1737_v27, %v1736_v26  ;;  %v589_v31 = vld [vmem:[%s2259_s16 + $0x28] sm:$0xff]  ;;  %v1734_v32 = vld [vmem:[%s2259_s16 + $0xa0] sm:$0xff]  ;;  %v586_v36 = vld [vmem:[%s2259_s16 + $0x10] sm:$0xff] }
  0x86   : > { %1872 = vmatpush.bf16.msra.mxu3 %v793_v11  ;;  %877 = vmatpush.bf16.msra.mxu1 %v793_v11  ;;  %v1735_v33 = vld [vmem:[%s2259_s16 + $0xa8] sm:$0xff]  ;;  %v602_v34 = vpack.c.bf16 %v589_v31, %v588_v30  ;;  %v587_v37 = vld [vmem:[%s2259_s16 + $0x18] sm:$0xff]  ;;  %v1732_v38 = vld [vmem:[%s2259_s16 + $0x90] sm:$0xff] }
  0x87   : > { %v789_v35 = vpack.c.bf16 %v1735_v33, %v1734_v32  ;;  %v1733_v39 = vld [vmem:[%s2259_s16 + $0x98] sm:$0xff]  ;;  %v601_v40 = vpack.c.bf16 %v587_v37, %v586_v36  ;;  %v584_v42 = vld [vmem:[%s2259_s16] sm:$0xff]  ;;  %v585_v43 = vld [vmem:[%s2259_s16 + $0x8] sm:$0xff] }
  0x88   : > { %v788_v41 = vpack.c.bf16 %v1733_v39, %v1732_v38  ;;  %v1730_v44 = vld [vmem:[%s2259_s16 + $0x80] sm:$0xff]  ;;  %v1731_v45 = vld [vmem:[%s2259_s16 + $0x88] sm:$0xff]  ;;  %v600_v46 = vpack.c.bf16 %v585_v43, %v584_v42  ;;  %v1849_v56 = vld [vmem:[%s2261_s17 + $0x10] sm:$0xff] }
  0x89   : > { %690 = vmatpush.bf16.msra.mxu0 %v605_v16  ;;  %1865 = vmatpush.bf16.msra.mxu2 %v605_v16  ;;  %v787_v47 = vpack.c.bf16 %v1731_v45, %v1730_v44  ;;  %v1847_v48 = vld [vmem:[%s2261_s17] sm:$0xff]  ;;  %v1848_v52 = vld [vmem:[%s2261_s17 + $0x8] sm:$0xff]  ;;  %v1853_v57 = vld [vmem:[%s2261_s17 + $0x30] sm:$0xff] }
  0x8a   : > { %1873 = vmatpush.bf16.msra.mxu3 %v792_v17  ;;  %878 = vmatpush.bf16.msra.mxu1 %v792_v17  ;;  %v1851_v49 = vld [vmem:[%s2261_s17 + $0x20] sm:$0xff]  ;;  %v1852_v53 = vld [vmem:[%s2261_s17 + $0x28] sm:$0xff]  ;;  %v1861_v58 = vld [vmem:[%s2261_s17 + $0x30] sm:$0xff] }
  0x8b   : > { %v1859_v50 = vld [vmem:[%s2261_s17 + $0x20] sm:$0xff]  ;;  %v1860_v54 = vld [vmem:[%s2261_s17 + $0x28] sm:$0xff]  ;;  %v1857_v59 = vld [vmem:[%s2261_s17 + $0x10] sm:$0xff] }
  0x8c   : > { %v1855_v51 = vld [vmem:[%s2261_s17] sm:$0xff]  ;;  %v1856_v55 = vld [vmem:[%s2261_s17 + $0x8] sm:$0xff]  ;;  %v1850_v60 = vld [vmem:[%s2261_s17 + $0x18] sm:$0xff] }
  0x8d   : > { %691 = vmatpush.bf16.msra.mxu0 %v604_v22  ;;  %1866 = vmatpush.bf16.msra.mxu2 %v604_v22  ;;  %v1854_v61 = vld [vmem:[%s2261_s17 + $0x38] sm:$0xff]  ;;  %v608_v0 = vld [vmem:[%s2257_s15] sm:$0xff]  ;;  %v609_v6 = vld [vmem:[%s2257_s15 + $0x8] sm:$0xff] }
  0x8e   : > { %1874 = vmatpush.bf16.msra.mxu3 %v791_v23  ;;  %879 = vmatpush.bf16.msra.mxu1 %v791_v23  ;;  %v1862_v62 = vld [vmem:[%s2261_s17 + $0x38] sm:$0xff]  ;;  %v616_v4 = vld [vmem:[%s2257_s15 + $0x40] sm:$0xff]  ;;  %v617_v14 = vld [vmem:[%s2257_s15 + $0x48] sm:$0xff] }
  0x8f   : > { %v1858_v63 = vld [vmem:[%s2261_s17 + $0x18] sm:$0xff]  ;;  %v1746_v12 = vld [vmem:[%s2257_s15 + $0x80] sm:$0xff]  ;;  %v610_v16 = vld [vmem:[%s2257_s15 + $0x10] sm:$0xff] }
  0x90   : > { %v1754_v19 = vld [vmem:[%s2257_s15 + $0xc0] sm:$0xff]  ;;  %v1747_v24 = vld [vmem:[%s2257_s15 + $0x88] sm:$0xff]  ;;  %v618_v26 = vld [vmem:[%s2257_s15 + $0x50] sm:$0xff] }
  0x91   : > { %692 = vmatpush.bf16.msra.mxu0 %v603_v28  ;;  %1867 = vmatpush.bf16.msra.mxu2 %v603_v28  ;;  %v611_v28 = vld [vmem:[%s2257_s15 + $0x18] sm:$0xff]  ;;  %v1755_v31 = vld [vmem:[%s2257_s15 + $0xc8] sm:$0xff]  ;;  %v1756_v42 = vld [vmem:[%s2257_s15 + $0xd0] sm:$0xff] }
  0x92   : > { %1875 = vmatpush.bf16.msra.mxu3 %v790_v29  ;;  %880 = vmatpush.bf16.msra.mxu1 %v790_v29  ;;  %v619_v38 = vld [vmem:[%s2257_s15 + $0x58] sm:$0xff] }
  0x95   : > { %693 = vmatpush.bf16.msra.mxu0 %v602_v34  ;;  %1868 = vmatpush.bf16.msra.mxu2 %v602_v34 }
  0x96   : > { %1876 = vmatpush.bf16.msra.mxu3 %v789_v35  ;;  %881 = vmatpush.bf16.msra.mxu1 %v789_v35  ;;  %v1748_v35 = vld [vmem:[%s2257_s15 + $0x90] sm:$0xff] }
  0x99   : > { %694 = vmatpush.bf16.msra.mxu0 %v601_v40  ;;  %1869 = vmatpush.bf16.msra.mxu2 %v601_v40  ;;  %v612_v40 = vld [vmem:[%s2257_s15 + $0x20] sm:$0xff] }
  0x9a   : > { %1877 = vmatpush.bf16.msra.mxu3 %v788_v41  ;;  %882 = vmatpush.bf16.msra.mxu1 %v788_v41 }
  0x9d   : > { %695 = vmatpush.bf16.msra.mxu0 %v600_v46  ;;  %1870 = vmatpush.bf16.msra.mxu2 %v600_v46 }
  0x9e   : > { %1878 = vmatpush.bf16.msra.mxu3 %v787_v47  ;;  %883 = vmatpush.bf16.msra.mxu1 %v787_v47  ;;  %v1749_v47 = vld [vmem:[%s2257_s15 + $0x98] sm:$0xff] }
  0xa0   : > { %696 = vmatmul.bf16.vlgmr.msra.gmra.mxu0 %v1847_v48  ;;  %716 = vmatmul.bf16.vlgmr.msra.gmra.mxu2 %v1851_v49  ;;  %v620_v49 = vld [vmem:[%s2257_s15 + $0x60] sm:$0xff] }
  0xa1   : > { %904 = vmatmul.bf16.vlgmr.msra.gmra.mxu3 %v1859_v50  ;;  %884 = vmatmul.bf16.vlgmr.msra.gmra.mxu1 %v1855_v51 }
  0xb0   : > { %701 = vmatmul.bf16.gmra.mxu0 %v1848_v52  ;;  %721 = vmatmul.bf16.gmra.mxu2 %v1852_v53  ;;  %v613_v52 = vld [vmem:[%s2257_s15 + $0x28] sm:$0xff] }
  0xb1   : > { %909 = vmatmul.bf16.gmra.mxu3 %v1860_v54  ;;  %889 = vmatmul.bf16.gmra.mxu1 %v1856_v55  ;;  %v1757_v54 = vld [vmem:[%s2257_s15 + $0xd8] sm:$0xff] }
  0xc0   : > { %706 = vmatmul.bf16.gmra.mxu0 %v1849_v56  ;;  %726 = vmatmul.bf16.gmra.mxu2 %v1853_v57 }
  0xc1   : > { %914 = vmatmul.bf16.gmra.mxu3 %v1861_v58  ;;  %894 = vmatmul.bf16.gmra.mxu1 %v1857_v59  ;;  %v1750_v59 = vld [vmem:[%s2257_s15 + $0xa0] sm:$0xff] }
  0xd0   : > { %711 = vmatmul.bf16.gmra.mxu0 %v1850_v60  ;;  %731 = vmatmul.bf16.gmra.mxu2 %v1854_v61  ;;  %v621_v61 = vld [vmem:[%s2257_s15 + $0x68] sm:$0xff] }
  0xd1   : > { %919 = vmatmul.bf16.gmra.mxu3 %v1862_v62  ;;  %899 = vmatmul.bf16.gmra.mxu1 %v1858_v63  ;;  %v614_v63 = vld [vmem:[%s2257_s15 + $0x30] sm:$0xff] }
 0x11d   : > { %v697_v1 = vpop.f32.mrf.mxu0 }
 0x11e   : > { %v737_v2 = vadd.f32 %v697_v1, %v608_v0  ;;  %v885_v3 = vpop.f32.mrf.mxu1 }
 0x11f   : > { %v925_v13 = vadd.f32 %v1746_v12, %v885_v3 }
 0x120   : > { %754 = vst.msk [vmem:[%s2257_s15] sm:$0xff] %vm753_vm1, %v737_v2  ;;  %v1758_v2 = vld [vmem:[%s2257_s15 + $0xe0] sm:$0xff] }
 0x121   : > { %1794 = vst.msk [vmem:[%s2257_s15 + $0x80] sm:$0xff] %vm753_vm1, %v925_v13  ;;  %v1759_v13 = vld [vmem:[%s2257_s15 + $0xe8] sm:$0xff] }
 0x123   : > { %v717_v5 = vpop.f32.mrf.mxu2 }
 0x124   : > { %v745_v7 = vadd.f32 %v717_v5, %v616_v4  ;;  %v905_v8 = vpop.f32.mrf.mxu3 }
 0x125   : > { %v699_v9 = vpop.f32.mrf.mxu0  ;;  %v933_v21 = vadd.f32 %v1754_v19, %v905_v8 }
 0x126   : > { %762 = vst.msk [vmem:[%s2257_s15 + $0x40] sm:$0xff] %vm753_vm1, %v745_v7  ;;  %v738_v10 = vadd.f32 %v699_v9, %v609_v6  ;;  %v887_v11 = vpop.f32.mrf.mxu1  ;;  %v1751_v6 = vld [vmem:[%s2257_s15 + $0xa8] sm:$0xff]  ;;  %v622_v9 = vld [vmem:[%s2257_s15 + $0x70] sm:$0xff] }
 0x127   : > { %1802 = vst.msk [vmem:[%s2257_s15 + $0xc0] sm:$0xff] %vm753_vm1, %v933_v21  ;;  %v926_v25 = vadd.f32 %v1747_v24, %v887_v11  ;;  %v615_v11 = vld [vmem:[%s2257_s15 + $0x38] sm:$0xff]  ;;  %v1760_v24 = vld [vmem:[%s2257_s15 + $0xf0] sm:$0xff] }
 0x128   : > { %755 = vst.msk [vmem:[%s2257_s15 + $0x8] sm:$0xff] %vm753_vm1, %v738_v10 }
 0x129   : > { %1795 = vst.msk [vmem:[%s2257_s15 + $0x88] sm:$0xff] %vm753_vm1, %v926_v25 }
 0x12b   : > { %v719_v15 = vpop.f32.mrf.mxu2 }
 0x12c   : > { %v746_v17 = vadd.f32 %v719_v15, %v617_v14  ;;  %v907_v18 = vpop.f32.mrf.mxu3 }
 0x12d   : > { %v702_v20 = vpop.f32.mrf.mxu0  ;;  %v934_v33 = vadd.f32 %v1755_v31, %v907_v18  ;;  %v1752_v18 = vld [vmem:[%s2257_s15 + $0xb0] sm:$0xff] }
 0x12e   : > { %763 = vst.msk [vmem:[%s2257_s15 + $0x48] sm:$0xff] %vm753_vm1, %v746_v17  ;;  %v739_v22 = vadd.f32 %v702_v20, %v610_v16  ;;  %v890_v23 = vpop.f32.mrf.mxu1  ;;  %v623_v20 = vld [vmem:[%s2257_s15 + $0x78] sm:$0xff] }
 0x12f   : > { %1803 = vst.msk [vmem:[%s2257_s15 + $0xc8] sm:$0xff] %vm753_vm1, %v934_v33  ;;  %v927_v37 = vadd.f32 %v1748_v35, %v890_v23 }
 0x130   : > { %756 = vst.msk [vmem:[%s2257_s15 + $0x10] sm:$0xff] %vm753_vm1, %v739_v22 }
 0x131   : > { %1796 = vst.msk [vmem:[%s2257_s15 + $0x90] sm:$0xff] %vm753_vm1, %v927_v37 }
 0x133   : > { %v722_v27 = vpop.f32.mrf.mxu2 }
 0x134   : > { %v747_v29 = vadd.f32 %v722_v27, %v618_v26  ;;  %v910_v30 = vpop.f32.mrf.mxu3  ;;  %v1753_v26 = vld [vmem:[%s2257_s15 + $0xb8] sm:$0xff] }
 0x135   : > { %v704_v32 = vpop.f32.mrf.mxu0  ;;  %v935_v45 = vadd.f32 %v1756_v42, %v910_v30 }
 0x136   : > { %764 = vst.msk [vmem:[%s2257_s15 + $0x50] sm:$0xff] %vm753_vm1, %v747_v29  ;;  %v740_v34 = vadd.f32 %v704_v32, %v611_v28  ;;  %v892_v36 = vpop.f32.mrf.mxu1  ;;  %v1761_v29 = vld [vmem:[%s2257_s15 + $0xf8] sm:$0xff] }
 0x137   : > { %1804 = vst.msk [vmem:[%s2257_s15 + $0xd0] sm:$0xff] %vm753_vm1, %v935_v45  ;;  %v928_v48 = vadd.f32 %v1749_v47, %v892_v36 }
 0x138   : > { %757 = vst.msk [vmem:[%s2257_s15 + $0x18] sm:$0xff] %vm753_vm1, %v740_v34 }
 0x139   : > { %1797 = vst.msk [vmem:[%s2257_s15 + $0x98] sm:$0xff] %vm753_vm1, %v928_v48 }
 0x13b   : > { %v724_v39 = vpop.f32.mrf.mxu2 }
 0x13c   : > { %v748_v41 = vadd.f32 %v724_v39, %v619_v38  ;;  %v912_v44 = vpop.f32.mrf.mxu3 }
 0x13d   : > { %v707_v43 = vpop.f32.mrf.mxu0  ;;  %v936_v56 = vadd.f32 %v1757_v54, %v912_v44 }
 0x13e   : > { %765 = vst.msk [vmem:[%s2257_s15 + $0x58] sm:$0xff] %vm753_vm1, %v748_v41  ;;  %v741_v46 = vadd.f32 %v707_v43, %v612_v40  ;;  %v895_v50 = vpop.f32.mrf.mxu1 }
 0x13f   : > { %1805 = vst.msk [vmem:[%s2257_s15 + $0xd8] sm:$0xff] %vm753_vm1, %v936_v56  ;;  %v929_v60 = vadd.f32 %v1750_v59, %v895_v50 }
 0x140   : > { %758 = vst.msk [vmem:[%s2257_s15 + $0x20] sm:$0xff] %vm753_vm1, %v741_v46 }
 0x141   : > { %1798 = vst.msk [vmem:[%s2257_s15 + $0xa0] sm:$0xff] %vm753_vm1, %v929_v60 }
 0x143   : > { %v727_v51 = vpop.f32.mrf.mxu2 }
 0x144   : > { %v749_v53 = vadd.f32 %v727_v51, %v620_v49  ;;  %v915_v58 = vpop.f32.mrf.mxu3 }
 0x145   : > { %v709_v55 = vpop.f32.mrf.mxu0  ;;  %v937_v4 = vadd.f32 %v1758_v2, %v915_v58 }
 0x146   : > { %766 = vst.msk [vmem:[%s2257_s15 + $0x60] sm:$0xff] %vm753_vm1, %v749_v53  ;;  %v742_v57 = vadd.f32 %v709_v55, %v613_v52  ;;  %v897_v1 = vpop.f32.mrf.mxu1 }
 0x147   : > { %1806 = vst.msk [vmem:[%s2257_s15 + $0xe0] sm:$0xff] %vm753_vm1, %v937_v4  ;;  %v930_v7 = vadd.f32 %v1751_v6, %v897_v1 }
 0x148   : > { %759 = vst.msk [vmem:[%s2257_s15 + $0x28] sm:$0xff] %vm753_vm1, %v742_v57 }
 0x149   : > { %1799 = vst.msk [vmem:[%s2257_s15 + $0xa8] sm:$0xff] %vm753_vm1, %v930_v7 }
 0x14b   : > { %v729_v62 = vpop.f32.mrf.mxu2 }
 0x14c   : > { %v750_v0 = vadd.f32 %v729_v62, %v621_v61  ;;  %v917_v8 = vpop.f32.mrf.mxu3 }
 0x14d   : > { %v712_v3 = vpop.f32.mrf.mxu0  ;;  %v938_v15 = vadd.f32 %v1759_v13, %v917_v8 }
 0x14e   : > { %767 = vst.msk [vmem:[%s2257_s15 + $0x68] sm:$0xff] %vm753_vm1, %v750_v0  ;;  %v743_v5 = vadd.f32 %v712_v3, %v614_v63  ;;  %v900_v17 = vpop.f32.mrf.mxu1 }
 0x14f   : > { %1807 = vst.msk [vmem:[%s2257_s15 + $0xe8] sm:$0xff] %vm753_vm1, %v938_v15  ;;  %v931_v19 = vadd.f32 %v1752_v18, %v900_v17 }
 0x150   : > { %760 = vst.msk [vmem:[%s2257_s15 + $0x30] sm:$0xff] %vm753_vm1, %v743_v5 }
 0x151   : > { %1800 = vst.msk [vmem:[%s2257_s15 + $0xb0] sm:$0xff] %vm753_vm1, %v931_v19 }
 0x153   : > { %v732_v10 = vpop.f32.mrf.mxu2 }
 0x154   : > { %v751_v12 = vadd.f32 %v732_v10, %v622_v9  ;;  %v920_v21 = vpop.f32.mrf.mxu3 }
 0x155   : > { %v714_v14 = vpop.f32.mrf.mxu0  ;;  %v939_v25 = vadd.f32 %v1760_v24, %v920_v21 }
 0x156   : > { %768 = vst.msk [vmem:[%s2257_s15 + $0x70] sm:$0xff] %vm753_vm1, %v751_v12  ;;  %v744_v16 = vadd.f32 %v714_v14, %v615_v11  ;;  %v902_v27 = vpop.f32.mrf.mxu1 }
 0x157   : > { %1808 = vst.msk [vmem:[%s2257_s15 + $0xf0] sm:$0xff] %vm753_vm1, %v939_v25  ;;  %v932_v28 = vadd.f32 %v1753_v26, %v902_v27 }
 0x158   : > { %761 = vst.msk [vmem:[%s2257_s15 + $0x38] sm:$0xff] %vm753_vm1, %v744_v16 }
 0x159   : > { %1801 = vst.msk [vmem:[%s2257_s15 + $0xb8] sm:$0xff] %vm753_vm1, %v932_v28 }
 0x15b   : > { %v734_v22 = vpop.f32.mrf.mxu2  ;;  %960 = sbr.rel (%p1810_p1) target bundleno = 1282 (0x502), region = 127 }
 0x15c   : > { %v752_v23 = vadd.f32 %v734_v22, %v623_v20  ;;  %v922_v30 = vpop.f32.mrf.mxu3 }
 0x15d   : > { %v940_v31 = vadd.f32 %v1761_v29, %v922_v30 }
 0x15e   : > { %769 = vst.msk [vmem:[%s2257_s15 + $0x78] sm:$0xff] %vm753_vm1, %v752_v23 }
 0x15f   : > { %1809 = vst.msk [vmem:[%s2257_s15 + $0xf8] sm:$0xff] %vm753_vm1, %v940_v31 }
 0x160   : > { %v2522_v32 = vld [vmem:[%s2257_s15] sm:$0xff]  ;;  %v2525_v33 = vld [vmem:[%s2257_s15 + $0x8] sm:$0xff]  ;;  %v2528_v34 = vld [vmem:[%s2257_s15 + $0x10] sm:$0xff]  ;;  %v2039_v16 = vmov 0  }
 0x161   : > { %v2531_v35 = vld [vmem:[%s2257_s15 + $0x18] sm:$0xff]  ;;  %v1009_v36 = vsel %vm753_vm1, %v2522_v32, 0.0  ;;  %v1010_v37 = vsel %vm753_vm1, %v2525_v33, 0.0  ;;  %v1012_v38 = vsel %vm753_vm1, %v2528_v34, 0.0  ;;  %v2540_v39 = vld [vmem:[%s2257_s15 + $0x20] sm:$0xff]  ;;  %v2545_v42 = vld [vmem:[%s2257_s15 + $0x28] sm:$0xff]  ;;  %1960 = vset.pattern.permute.xlu1 %v2039_v16  ;;  %1961 = vset.pattern.permute.xlu2 %v2039_v16 }
 0x162   : > { %v1011_v40 = vadd.f32 %v1010_v37, %v1009_v36  ;;  %v1014_v41 = vsel %vm753_vm1, %v2531_v35, 0.0  ;;  %v1016_v44 = vsel %vm753_vm1, %v2540_v39, 0.0  ;;  %v2550_v45 = vld [vmem:[%s2257_s15 + $0x30] sm:$0xff]  ;;  %v1018_v47 = vsel %vm753_vm1, %v2545_v42, 0.0  ;;  %v2555_v48 = vld [vmem:[%s2257_s15 + $0x38] sm:$0xff]  ;;  %v2560_v51 = vld [vmem:[%s2257_s15 + $0x40] sm:$0xff]  ;;  %1962 = vset.pattern.permute.xlu0 %v2039_v16 }
 0x163   : > { %v1020_v50 = vsel %vm753_vm1, %v2550_v45, 0.0  ;;  %v1022_v53 = vsel %vm753_vm1, %v2555_v48, 0.0  ;;  %v2565_v54 = vld [vmem:[%s2257_s15 + $0x48] sm:$0xff]  ;;  %v1024_v56 = vsel %vm753_vm1, %v2560_v51, 0.0  ;;  %v2570_v57 = vld [vmem:[%s2257_s15 + $0x50] sm:$0xff]  ;;  %v2575_v60 = vld [vmem:[%s2257_s15 + $0x58] sm:$0xff] }
 0x164   : > { %v1013_v43 = vadd.f32 %v1012_v38, %v1011_v40  ;;  %v1026_v59 = vsel %vm753_vm1, %v2565_v54, 0.0  ;;  %v1028_v62 = vsel %vm753_vm1, %v2570_v57, 0.0  ;;  %v2580_v63 = vld [vmem:[%s2257_s15 + $0x60] sm:$0xff]  ;;  %v1030_v1 = vsel %vm753_vm1, %v2575_v60, 0.0  ;;  %v2585_v2 = vld [vmem:[%s2257_s15 + $0x68] sm:$0xff]  ;;  %v2590_v5 = vld [vmem:[%s2257_s15 + $0x70] sm:$0xff] }
 0x165   : > { %v1032_v4 = vsel %vm753_vm1, %v2580_v63, 0.0  ;;  %v1034_v7 = vsel %vm753_vm1, %v2585_v2, 0.0  ;;  %v2595_v8 = vld [vmem:[%s2257_s15 + $0x78] sm:$0xff]  ;;  %v1036_v10 = vsel %vm753_vm1, %v2590_v5, 0.0  ;;  %v961_v15 = vld [vmem:[%s3191_s3] sm:$0xff]  ;;  %v962_v17 = vld [vmem:[%s3191_s3 + $0x8] sm:$0xff] }
 0x166   : > { %v1015_v46 = vadd.f32 %v1014_v41, %v1013_v43  ;;  %v1038_v12 = vsel %vm753_vm1, %v2595_v8, 0.0  ;;  %1154 = vperm.xlu1 %1960, %v961_v15   ;;  %v964_v18 = vld [vmem:[%s3191_s3 + $0x18] sm:$0xff]  ;;  %v965_v22 = vld [vmem:[%s3191_s3 + $0x20] sm:$0xff]  ;;  %v966_v27 = vld [vmem:[%s3191_s3 + $0x28] sm:$0xff] }
 0x167   : > { %v963_v28 = vld [vmem:[%s3191_s3 + $0x10] sm:$0xff]  ;;  %v977_v30 = vld [vmem:[%s3192_s4] sm:$0xff]  ;;  %v968_v31 = vld [vmem:[%s3191_s3 + $0x38] sm:$0xff] }
 0x168   : > { %v1017_v49 = vadd.f32 %v1016_v44, %v1015_v46  ;;  %v967_v29 = vld [vmem:[%s3191_s3 + $0x30] sm:$0xff]  ;;  %1164 = vperm.xlu2 %1961, %v963_v28   ;;  %v984_v37 = vld [vmem:[%s3192_s4 + $0x38] sm:$0xff]  ;;  %v981_v41 = vld [vmem:[%s3192_s4 + $0x20] sm:$0xff] }
 0x169   : > { %v979_v36 = vld [vmem:[%s3192_s4 + $0x10] sm:$0xff]  ;;  %v980_v38 = vld [vmem:[%s3192_s4 + $0x18] sm:$0xff] }
 0x16a   : > { %v1019_v52 = vadd.f32 %v1018_v47, %v1017_v49  ;;  %v971_v40 = vld [vmem:[%s3191_s3 + $0x50] sm:$0xff] }
 0x16b   : > { %v987_v43 = vld [vmem:[%s3192_s4 + $0x50] sm:$0xff] }
 0x16c   : > { %v1021_v55 = vadd.f32 %v1020_v50, %v1019_v52 }
 0x16e   : > { %v1023_v58 = vadd.f32 %v1022_v53, %v1021_v55  ;;  %1159 = vperm.xlu1 %1960, %v962_v17  }
 0x170   : > { %v1025_v61 = vadd.f32 %v1024_v56, %v1023_v58  ;;  %1250 = vperm.xlu2 %1961, %v977_v30  }
 0x172   : > { %v1027_v0 = vadd.f32 %v1026_v59, %v1025_v61 }
 0x174   : > { %v1029_v3 = vadd.f32 %v1028_v62, %v1027_v0 }
 0x176   : > { %v1031_v6 = vadd.f32 %v1030_v1, %v1029_v3  ;;  %1169 = vperm.xlu1 %1960, %v964_v18  }
 0x178   : > { %v1033_v9 = vadd.f32 %v1032_v4, %v1031_v6  ;;  %1260 = vperm.xlu2 %1961, %v979_v36   ;;  %v992_v36 = vld [vmem:[%s3192_s4 + $0x78] sm:$0xff] }
 0x17a   : > { %v1035_v11 = vadd.f32 %v1034_v7, %v1033_v9  ;;  %v990_v9 = vld [vmem:[%s3192_s4 + $0x68] sm:$0xff] }
 0x17c   : > { %v1037_v13 = vadd.f32 %v1036_v10, %v1035_v11 }
 0x17e   : > { %v1039_v14 = vadd.f32 %v1038_v12, %v1037_v13  ;;  %1174 = vperm.xlu1 %1960, %v965_v22  }
 0x180   : > { %1040 = vadd.xlane.f32.xlu0 %v1039_v14  ;;  %1265 = vperm.xlu2 %1961, %v980_v38  }
 0x186   : > { %1179 = vperm.xlu1 %1960, %v966_v27  }
 0x188   : > { %1270 = vperm.xlu2 %1961, %v981_v41  }
 0x18e   : > { %1184 = vperm.xlu1 %1960, %v967_v29  }
 0x196   : > { %1189 = vperm.xlu1 %1960, %v968_v31  }
 0x19e   : > { %1285 = vperm.xlu1 %1960, %v984_v37  }
 0x1a6   : > { %1204 = vperm.xlu1 %1960, %v971_v40  }
 0x1ae   : > { %1300 = vperm.xlu1 %1960, %v987_v43  }
 0x1f3   : > { %v1041_v19 = vpop.xlane.xlu0 %1040 }
 0x1f4   : > { %v1042_v20 = vrot.slane %v1041_v19, 4 }
 0x1f6   : > { %v1043_v21 = vadd.f32 %v1042_v20, %v1041_v19 }
 0x1f8   : > { %v1044_v23 = vrot.slane %v1043_v21, 2 }
 0x1fa   : > { %v1045_v24 = vadd.f32 %v1044_v23, %v1043_v21 }
 0x1fc   : > { %v1046_v25 = vrot.slane %v1045_v24, 1 }
 0x1fe   : > { %v1047_v26 = vadd.f32 %v1046_v25, %v1045_v24 }
 0x200   : > { %1879 = vpush %v1047_v26 }
 0x231   : > { %s1880_s6 = spop %1879 }
 0x232   : > { %v1049_v44 = vstv %s1880_s6 }
 0x233   : > { %v1050_v46 = vmul.f32 0.00012207031, %v1049_v44 }
 0x235   : > { %v2647_v47 = vsub.f32 %v2522_v32, %v1050_v46  ;;  %v2650_v49 = vsub.f32 %v2525_v33, %v1050_v46  ;;  %v2653_v50 = vsub.f32 %v2528_v34, %v1050_v46  ;;  %v2656_v52 = vsub.f32 %v2531_v35, %v1050_v46  ;;  %v982_v33 = vld [vmem:[%s3192_s4 + $0x28] sm:$0xff] }
 0x236   : > { %v2663_v56 = vsub.f32 %v2540_v39, %v1050_v46  ;;  %v974_v34 = vld [vmem:[%s3191_s3 + $0x68] sm:$0xff]  ;;  %v2674_v35 = vsub.f32 %v2545_v42, %v1050_v46  ;;  %1275 = vperm.xlu2 %1961, %v982_v33   ;;  %v2681_v62 = vsub.f32 %v2550_v45, %v1050_v46  ;;  %v2687_v3 = vsub.f32 %v2555_v48, %v1050_v46  ;;  %v983_v45 = vld [vmem:[%s3192_s4 + $0x30] sm:$0xff] }
 0x237   : > { %v1067_v53 = vmul.f32 %v2647_v47, %v2647_v47  ;;  %v1068_v55 = vmul.f32 %v2650_v49, %v2650_v49  ;;  %v1069_v32 = vmul.f32 %v2653_v50, %v2653_v50  ;;  %v1070_v58 = vmul.f32 %v2656_v52, %v2656_v52  ;;  %1219 = vperm.xlu1 %1960, %v974_v34   ;;  %v986_v33 = vld [vmem:[%s3192_s4 + $0x48] sm:$0xff] }
 0x238   : > { %v1071_v0 = vmul.f32 %v2663_v56, %v2663_v56  ;;  %v1072_v4 = vmul.f32 %v2674_v35, %v2674_v35  ;;  %v2699_v10 = vsub.f32 %v2560_v51, %v1050_v46  ;;  %v1073_v48 = vmul.f32 %v2681_v62, %v2681_v62 }
 0x239   : > { %v1083_v39 = vsel %vm753_vm1, %v1067_v53, 0.0  ;;  %v1084_v59 = vsel %vm753_vm1, %v1068_v55, 0.0  ;;  %v1086_v1 = vsel %vm753_vm1, %v1069_v32, 0.0  ;;  %v1088_v6 = vsel %vm753_vm1, %v1070_v58, 0.0 }
 0x23a   : > { %v1085_v61 = vadd.f32 %v1084_v59, %v1083_v39  ;;  %v1090_v11 = vsel %vm753_vm1, %v1071_v0, 0.0  ;;  %v2705_v13 = vsub.f32 %v2565_v54, %v1050_v46  ;;  %v1074_v14 = vmul.f32 %v2687_v3, %v2687_v3  ;;  %v973_v39 = vld [vmem:[%s3191_s3 + $0x60] sm:$0xff]  ;;  %v976_v0 = vld [vmem:[%s3191_s3 + $0x78] sm:$0xff] }
 0x23b   : > { %v1092_v15 = vsel %vm753_vm1, %v1072_v4, 0.0  ;;  %v2711_v51 = vsub.f32 %v2570_v57, %v1050_v46  ;;  %v1075_v17 = vmul.f32 %v2699_v10, %v2699_v10  ;;  %v1094_v18 = vsel %vm753_vm1, %v1073_v48, 0.0  ;;  %v989_v59 = vld [vmem:[%s3192_s4 + $0x60] sm:$0xff]  ;;  %v972_v4 = vld [vmem:[%s3191_s3 + $0x58] sm:$0xff]  ;;  %v2795_v48 = vpop.permute.xlu2 %1164 }
 0x23c   : > { %v1087_v42 = vadd.f32 %v1086_v1, %v1085_v61  ;;  %v2717_v54 = vsub.f32 %v2575_v60, %v1050_v46  ;;  %v1076_v20 = vmul.f32 %v2705_v13, %v2705_v13  ;;  %v1096_v21 = vsel %vm753_vm1, %v1074_v14, 0.0  ;;  %v978_v61 = vld [vmem:[%s3192_s4 + $0x8] sm:$0xff]  ;;  %v969_v1 = vld [vmem:[%s3191_s3 + $0x40] sm:$0xff] }
 0x23d   : > { %v2723_v23 = vsub.f32 %v2580_v63, %v1050_v46  ;;  %v1077_v57 = vmul.f32 %v2711_v51, %v2711_v51  ;;  %v1098_v24 = vsel %vm753_vm1, %v1075_v17, 0.0  ;;  %v2729_v26 = vsub.f32 %v2585_v2, %v1050_v46  ;;  %v970_v2 = vld [vmem:[%s3191_s3 + $0x48] sm:$0xff] }
 0x23e   : > { %v1089_v7 = vadd.f32 %v1088_v6, %v1087_v42  ;;  %1280 = vperm.xlu2 %1961, %v983_v45   ;;  %v1078_v60 = vmul.f32 %v2717_v54, %v2717_v54  ;;  %v1100_v27 = vsel %vm753_vm1, %v1076_v20, 0.0  ;;  %v2735_v29 = vsub.f32 %v2590_v5, %v1050_v46  ;;  %v985_v42 = vld [vmem:[%s3192_s4 + $0x40] sm:$0xff]  ;;  %v988_v6 = vld [vmem:[%s3192_s4 + $0x58] sm:$0xff]  ;;  %v991_v45 = vld [vmem:[%s3192_s4 + $0x70] sm:$0xff] }
 0x23f   : > { %1315 = vperm.xlu1 %1960, %v990_v9   ;;  %v1079_v63 = vmul.f32 %v2723_v23, %v2723_v23  ;;  %v1102_v30 = vsel %vm753_vm1, %v1077_v57, 0.0  ;;  %v2747_v37 = vsub.f32 %v2595_v8, %v1050_v46  ;;  %v1080_v5 = vmul.f32 %v2729_v26, %v2729_v26  ;;  %v2793_v9 = vpop.permute.xlu1 %1154 }
 0x240   : > { %v1091_v12 = vadd.f32 %v1090_v11, %v1089_v7  ;;  %v1104_v38 = vsel %vm753_vm1, %v1078_v60, 0.0  ;;  %v1081_v41 = vmul.f32 %v2735_v29, %v2735_v29  ;;  %v975_v7 = vld [vmem:[%s3191_s3 + $0x70] sm:$0xff] }
 0x241   : > { %v1106_v43 = vsel %vm753_vm1, %v1079_v63, 0.0  ;;  %v1082_v53 = vmul.f32 %v2747_v37, %v2747_v37  ;;  %v1108_v8 = vsel %vm753_vm1, %v1080_v5, 0.0 }
 0x242   : > { %v1093_v16 = vadd.f32 %v1092_v15, %v1091_v12  ;;  %v1110_v55 = vsel %vm753_vm1, %v1081_v41, 0.0 }
 0x243   : > { %v1112_v34 = vsel %vm753_vm1, %v1082_v53, 0.0  ;;  %v2799_v14 = vpop.permute.xlu2 %1250 }
 0x244   : > { %v1095_v19 = vadd.f32 %v1094_v18, %v1093_v16 }
 0x246   : > { %v1097_v22 = vadd.f32 %v1096_v21, %v1095_v19  ;;  %1199 = vperm.xlu2 %1961, %v970_v2  }
 0x247   : > { %1325 = vperm.xlu1 %1960, %v992_v36   ;;  %v2797_v11 = vpop.permute.xlu1 %1159 }
 0x248   : > { %v1099_v25 = vadd.f32 %v1098_v24, %v1097_v22 }
 0x24a   : > { %v1101_v28 = vadd.f32 %v1100_v27, %v1099_v25 }
 0x24b   : > { %v2803_v21 = vpop.permute.xlu2 %1260 }
 0x24c   : > { %v1103_v31 = vadd.f32 %v1102_v30, %v1101_v28 }
 0x24e   : > { %v1105_v40 = vadd.f32 %v1104_v38, %v1103_v31  ;;  %1295 = vperm.xlu2 %1961, %v986_v33  }
 0x24f   : > { %v2801_v17 = vpop.permute.xlu1 %1169 }
 0x250   : > { %v1107_v44 = vadd.f32 %v1106_v43, %v1105_v40 }
 0x252   : > { %v1109_v46 = vadd.f32 %v1108_v8, %v1107_v44 }
 0x253   : > { %v2807_v24 = vpop.permute.xlu2 %1265 }
 0x254   : > { %v1111_v32 = vadd.f32 %v1110_v55, %v1109_v46 }
 0x256   : > { %v1113_v58 = vadd.f32 %v1112_v34, %v1111_v32  ;;  %1214 = vperm.xlu2 %1961, %v973_v39  }
 0x257   : > { %v2805_v57 = vpop.permute.xlu1 %1174 }
 0x258   : > { %1114 = vadd.xlane.f32.xlu0 %v1113_v58 }
 0x25b   : > { %v2813_v27 = vpop.permute.xlu2 %1270 }
 0x25e   : > { %1310 = vperm.xlu2 %1961, %v989_v59  }
 0x25f   : > { %v2809_v25 = vpop.permute.xlu1 %1179 }
 0x266   : > { %1229 = vperm.xlu2 %1961, %v976_v0  }
 0x267   : > { %v2815_v28 = vpop.permute.xlu1 %1184 }
 0x26c   : > { %1255 = vperm.xlu0 %1962, %v978_v61  }
 0x26f   : > { %v2821_v31 = vpop.permute.xlu1 %1189 }
 0x274   : > { %1194 = vperm.xlu0 %1962, %v969_v1  }
 0x277   : > { %v2827_v5 = vpop.permute.xlu1 %1285 }
 0x27c   : > { %1290 = vperm.xlu0 %1962, %v985_v42  }
 0x27f   : > { %v2833_v44 = vpop.permute.xlu1 %1204 }
 0x284   : > { %1209 = vperm.xlu0 %1962, %v972_v4  }
 0x287   : > { %v2839_v32 = vpop.permute.xlu1 %1300 }
 0x28c   : > { %1305 = vperm.xlu0 %1962, %v988_v6  }
 0x290   : > { %v2819_v30 = vpop.permute.xlu2 %1275 }
 0x294   : > { %1224 = vperm.xlu0 %1962, %v975_v7  }
 0x298   : > { %v2825_v36 = vpop.permute.xlu2 %1280 }
 0x29c   : > { %1320 = vperm.xlu0 %1962, %v991_v45  }
 0x2a0   : > { %v2831_v40 = vpop.permute.xlu2 %1199 }
 0x2a8   : > { %v2837_v46 = vpop.permute.xlu2 %1295 }
 0x2a9   : > { %v2845_v1 = vpop.permute.xlu1 %1219 }
 0x2b0   : > { %v2843_v59 = vpop.permute.xlu2 %1214 }
 0x2cb   : > { %v1115_v12 = vpop.xlane.xlu0 %1114 }
 0x2cc   : > { %v1116_v15 = vrot.slane %v1115_v12, 4 }
 0x2ce   : > { %v1117_v16 = vadd.f32 %v1116_v15, %v1115_v12 }
 0x2d0   : > { %v1118_v18 = vrot.slane %v1117_v16, 2 }
 0x2d2   : > { %v1119_v19 = vadd.f32 %v1118_v18, %v1117_v16 }
 0x2d4   : > { %v1120_v20 = vrot.slane %v1119_v19, 1 }
 0x2d6   : > { %v1121_v22 = vadd.f32 %v1120_v20, %v1119_v19 }
 0x2d8   : > { %1881 = vpush %v1121_v22  ;;  %v2861_v22 = vpop.permute.xlu2 %1310 }
 0x2de   : > { %v2811_v60 = vpop.permute.xlu0 %1255 }
 0x2e6   : > { %v2817_v63 = vpop.permute.xlu0 %1194 }
 0x2ee   : > { %v2823_v2 = vpop.permute.xlu0 %1290 }
 0x2f6   : > { %v2829_v38 = vpop.permute.xlu0 %1209 }
 0x2fe   : > { %v2835_v8 = vpop.permute.xlu0 %1305 }
 0x306   : > { %v2841_v58 = vpop.permute.xlu0 %1224 }
 0x309   : > { %s1882_s13 = spop %1881 }
 0x30a   : > { %v1123_v41 = vstv %s1882_s13 }
 0x30b   : > { %v1124_v43 = vmul.f32 0.00012207031, %v1123_v41 }
 0x30d   : > { %v1125_v53 = vadd.f32 1e-05, %v1124_v43 }
 0x30e   : > { %v2854_v18 = vpop.permute.xlu0 %1320 }
 0x30f   : > { %1963 = vrsqrt.f32 %v1125_v53  ;;  %vm1132_vm3 = vweird.f32 %v1125_v53  ;;  %3199 = vst [vmem:[#allocation4_spill] sm:$0xff] %v2854_v18 }
 0x315   : > { %v1964_v55 = vpop.eup %1963 }
 0x316   : > { %v1127_v33 = vmul.f32 %v1964_v55, %v1125_v53  ;;  %vm1133_vm2 = vweird.f32 %v1964_v55 }
 0x317   : > { %vm1134_vm4 = vmor %vm1132_vm3, %vm1133_vm2 }
 0x318   : > { %v1128_v34 = vmul.f32 %v1964_v55, %v1127_v33 }
 0x31a   : > { %v1129_v39 = vmul.f32 0.5, %v1128_v34 }
 0x31c   : > { %v1130_v61 = vsub.f32 1.5, %v1129_v39 }
 0x31e   : > { %v1131_v0 = vmul.f32 %v1964_v55, %v1130_v61 }
 0x320   : > { %v1135_v42 = vsel %vm1134_vm4, %v1964_v55, %v1131_v0 }
 0x321   : > { %v1150_v4 = vmul.f32 %v1135_v42, %v2735_v29  ;;  %v1136_v6 = vmul.f32 %v1135_v42, %v2647_v47  ;;  %v1137_v7 = vmul.f32 %v1135_v42, %v2650_v49  ;;  %v1138_v45 = vmul.f32 %v1135_v42, %v2653_v50 }
 0x322   : > { %v1139_v12 = vmul.f32 %v1135_v42, %v2656_v52  ;;  %v1140_v16 = vmul.f32 %v1135_v42, %v2663_v56  ;;  %v1141_v19 = vmul.f32 %v1135_v42, %v2674_v35  ;;  %v1142_v29 = vmul.f32 %v1135_v42, %v2681_v62 }
 0x323   : > { %v1246_v15 = vmul.f32 %v2841_v58, %v1150_v4  ;;  %v1232_v47 = vmul.f32 %v2793_v9, %v1136_v6  ;;  %v1233_v49 = vmul.f32 %v2797_v11, %v1137_v7  ;;  %v1143_v50 = vmul.f32 %v1135_v42, %v2687_v3 }
 0x324   : > { %v1234_v52 = vmul.f32 %v2795_v48, %v1138_v45  ;;  %v1235_v56 = vmul.f32 %v2801_v17, %v1139_v12  ;;  %v1144_v35 = vmul.f32 %v1135_v42, %v2699_v10  ;;  %v1236_v41 = vmul.f32 %v2805_v57, %v1140_v16  ;;  %v2877_v10 = vpop.permute.xlu1 %1315 }
 0x325   : > { %v1342_v20 = vadd.f32 %v2854_v18, %v1246_v15  ;;  %v1145_v62 = vmul.f32 %v1135_v42, %v2705_v13  ;;  %v1146_v43 = vmul.f32 %v1135_v42, %v2711_v51  ;;  %v1237_v53 = vmul.f32 %v2809_v25, %v1141_v19  ;;  %3200 = vst [vmem:[#allocation5_spill] sm:$0xff] %v2877_v10 }
 0x326   : > { %v1238_v3 = vmul.f32 %v2815_v28, %v1142_v29  ;;  %v1328_v55 = vadd.f32 %v2799_v14, %v1232_v47  ;;  %v1329_v33 = vadd.f32 %v2811_v60, %v1233_v49  ;;  %v1330_v34 = vadd.f32 %v2803_v21, %v1234_v52 }
 0x327   : > { %1358 = vst.msk [vmem:[%s2257_s15 + $0x70] sm:$0xff] %vm753_vm1, %v1342_v20  ;;  %v1147_v39 = vmul.f32 %v1135_v42, %v2717_v54  ;;  %v1239_v13 = vmul.f32 %v2821_v31, %v1143_v50  ;;  %v1331_v51 = vadd.f32 %v2807_v24, %v1235_v56  ;;  %v1148_v61 = vmul.f32 %v1135_v42, %v2723_v23  ;;  %v2919_v50 = vld [vmem:[%s2257_s15 + $0x80] sm:$0xff]  ;;  %v2925_v56 = vld [vmem:[%s2257_s15 + $0x88] sm:$0xff] }
 0x328   : > { %v1240_v0 = vmul.f32 %v2817_v63, %v1144_v35  ;;  %v1332_v4 = vadd.f32 %v2813_v27, %v1236_v41  ;;  %1344 = vst.msk [vmem:[%s2257_s15] sm:$0xff] %vm753_vm1, %v1328_v55  ;;  %v1149_v6 = vmul.f32 %v1135_v42, %v2729_v26  ;;  %v1241_v7 = vmul.f32 %v2831_v40, %v1145_v62  ;;  %v1814_v55 = vld [vmem:[%s2257_s15 + $0x98] sm:$0xff] }
 0x329   : > { %v1333_v54 = vadd.f32 %v2819_v30, %v1237_v53  ;;  %1345 = vst.msk [vmem:[%s2257_s15 + $0x8] sm:$0xff] %vm753_vm1, %v1329_v33  ;;  %v1151_v45 = vmul.f32 %v1135_v42, %v2747_v37  ;;  %v1242_v23 = vmul.f32 %v2833_v44, %v1146_v43  ;;  %v1334_v12 = vadd.f32 %v2825_v36, %v1238_v3  ;;  %v2905_v42 = vpop.permute.xlu2 %1229  ;;  %v2935_v43 = vld [vmem:[%s2257_s15 + $0x90] sm:$0xff] }
 0x32a   : > { %1346 = vst.msk [vmem:[%s2257_s15 + $0x10] sm:$0xff] %vm753_vm1, %v1330_v34  ;;  %v1243_v26 = vmul.f32 %v2829_v38, %v1147_v39  ;;  %v1335_v15 = vadd.f32 %v2827_v5, %v1239_v13  ;;  %v1244_v16 = vmul.f32 %v2843_v59, %v1148_v61  ;;  %v1336_v37 = vadd.f32 %v2823_v2, %v1240_v0  ;;  %v1815_v39 = vld [vmem:[%s2257_s15 + $0xa0] sm:$0xff]  ;;  %v1816_v61 = vld [vmem:[%s2257_s15 + $0xa8] sm:$0xff] }
 0x32b   : > { %1347 = vst.msk [vmem:[%s2257_s15 + $0x18] sm:$0xff] %vm753_vm1, %v1331_v51  ;;  %v1245_v19 = vmul.f32 %v2845_v1, %v1149_v6  ;;  %v1337_v20 = vadd.f32 %v2837_v46, %v1241_v7  ;;  %v1247_v29 = vmul.f32 %v2905_v42, %v1151_v45  ;;  %v1338_v47 = vadd.f32 %v2839_v32, %v1242_v23  ;;  %v1817_v6 = vld [vmem:[%s2257_s15 + $0xb0] sm:$0xff]  ;;  %v1818_v45 = vld [vmem:[%s2257_s15 + $0xb8] sm:$0xff] }
 0x32c   : > { %1348 = vst.msk [vmem:[%s2257_s15 + $0x20] sm:$0xff] %vm753_vm1, %v1332_v4  ;;  %v1339_v49 = vadd.f32 %v2835_v8, %v1243_v26  ;;  %v1340_v52 = vadd.f32 %v2861_v22, %v1244_v16  ;;  %v1376_v35 = vsel %vm753_vm1, %v2919_v50, 0.0  ;;  %v2929_v41 = vpop.permute.xlu1 %1325  ;;  %v1377_v53 = vsel %vm753_vm1, %v2925_v56, 0.0  ;;  %v1819_v26 = vld [vmem:[%s2257_s15 + $0xc0] sm:$0xff] }
 0x32d   : > { %1349 = vst.msk [vmem:[%s2257_s15 + $0x28] sm:$0xff] %vm753_vm1, %v1333_v54  ;;  %v1341_v62 = vadd.f32 %v2877_v10, %v1245_v19  ;;  %v1343_v3 = vadd.f32 %v2929_v41, %v1247_v29  ;;  %v1378_v33 = vadd.f32 %v1377_v53, %v1376_v35  ;;  %v1379_v34 = vsel %vm753_vm1, %v2935_v43, 0.0  ;;  %v1821_v29 = vld [vmem:[%s2257_s15 + $0xd0] sm:$0xff]  ;;  %v2972_v53 = vld [vmem:[%s2257_s15 + $0xe0] sm:$0xff] }
 0x32e   : > { %1350 = vst.msk [vmem:[%s2257_s15 + $0x30] sm:$0xff] %vm753_vm1, %v1334_v12  ;;  %v1381_v51 = vsel %vm753_vm1, %v1814_v55, 0.0  ;;  %v1383_v4 = vsel %vm753_vm1, %v1815_v39, 0.0  ;;  %v1385_v54 = vsel %vm753_vm1, %v1816_v61, 0.0  ;;  %v1387_v12 = vsel %vm753_vm1, %v1817_v6, 0.0 }
 0x32f   : > { %1351 = vst.msk [vmem:[%s2257_s15 + $0x38] sm:$0xff] %vm753_vm1, %v1335_v15  ;;  %v1380_v13 = vadd.f32 %v1379_v34, %v1378_v33  ;;  %v1389_v16 = vsel %vm753_vm1, %v1818_v45, 0.0  ;;  %v2977_v34 = vld [vmem:[%s2257_s15 + $0xe8] sm:$0xff] }
 0x330   : > { %1352 = vst.msk [vmem:[%s2257_s15 + $0x40] sm:$0xff] %vm753_vm1, %v1336_v37  ;;  %v1820_v37 = vld [vmem:[%s2257_s15 + $0xc8] sm:$0xff] }
 0x331   : > { %3201 = vst [vmem:[#allocation6_spill] sm:$0xff] %v2929_v41  ;;  %v1382_v0 = vadd.f32 %v1381_v51, %v1380_v13  ;;  %v1399_v51 = vsel %vm753_vm1, %v2972_v53, 0.0 }
 0x332   : > { %1353 = vst.msk [vmem:[%s2257_s15 + $0x48] sm:$0xff] %vm753_vm1, %v1337_v20  ;;  %v1391_v20 = vsel %vm753_vm1, %v1819_v26, 0.0 }
 0x333   : > { %1354 = vst.msk [vmem:[%s2257_s15 + $0x50] sm:$0xff] %vm753_vm1, %v1338_v47  ;;  %v1384_v7 = vadd.f32 %v1383_v4, %v1382_v0  ;;  %v2982_v0 = vld [vmem:[%s2257_s15 + $0xf0] sm:$0xff] }
 0x334   : > { %1355 = vst.msk [vmem:[%s2257_s15 + $0x58] sm:$0xff] %vm753_vm1, %v1339_v49  ;;  %v1393_v49 = vsel %vm753_vm1, %v1820_v37, 0.0 }
 0x335   : > { %1356 = vst.msk [vmem:[%s2257_s15 + $0x60] sm:$0xff] %vm753_vm1, %v1340_v52  ;;  %v1386_v23 = vadd.f32 %v1385_v54, %v1384_v7  ;;  %v2968_v52 = vld [vmem:[%s2257_s15 + $0xd8] sm:$0xff]  ;;  %v1401_v7 = vsel %vm753_vm1, %v2977_v34, 0.0 }
 0x336   : > { %1357 = vst.msk [vmem:[%s2257_s15 + $0x68] sm:$0xff] %vm753_vm1, %v1341_v62  ;;  %v1395_v62 = vsel %vm753_vm1, %v1821_v29, 0.0  ;;  %v1397_v33 = vsel %vm753_vm1, %v2968_v52, 0.0  ;;  %v2987_v54 = vld [vmem:[%s2257_s15 + $0xf8] sm:$0xff] }
 0x337   : > { %1359 = vst.msk [vmem:[%s2257_s15 + $0x78] sm:$0xff] %vm753_vm1, %v1343_v3  ;;  %v1388_v15 = vadd.f32 %v1387_v12, %v1386_v23  ;;  %v1403_v12 = vsel %vm753_vm1, %v2982_v0, 0.0 }
 0x339   : > { %v1390_v19 = vadd.f32 %v1389_v16, %v1388_v15  ;;  %v1405_v16 = vsel %vm753_vm1, %v2987_v54, 0.0 }
 0x33b   : > { %v1392_v47 = vadd.f32 %v1391_v20, %v1390_v19 }
 0x33d   : > { %v1394_v35 = vadd.f32 %v1393_v49, %v1392_v47 }
 0x33f   : > { %v1396_v3 = vadd.f32 %v1395_v62, %v1394_v35 }
 0x341   : > { %v1398_v13 = vadd.f32 %v1397_v33, %v1396_v3 }
 0x343   : > { %v1400_v4 = vadd.f32 %v1399_v51, %v1398_v13 }
 0x345   : > { %v1402_v23 = vadd.f32 %v1401_v7, %v1400_v4 }
 0x347   : > { %v1404_v15 = vadd.f32 %v1403_v12, %v1402_v23 }
 0x349   : > { %v1406_v19 = vadd.f32 %v1405_v16, %v1404_v15 }
 0x34b   : > { %1407 = vadd.xlane.f32.xlu2 %v1406_v19 }
 0x3be   : > { %v1408_v20 = vpop.xlane.xlu2 %1407 }
 0x3bf   : > { %v1409_v47 = vrot.slane %v1408_v20, 4 }
 0x3c1   : > { %v1410_v49 = vadd.f32 %v1409_v47, %v1408_v20 }
 0x3c3   : > { %v1411_v35 = vrot.slane %v1410_v49, 2 }
 0x3c5   : > { %v1412_v62 = vadd.f32 %v1411_v35, %v1410_v49 }
 0x3c7   : > { %v1413_v3 = vrot.slane %v1412_v62, 1 }
 0x3c9   : > { %v1414_v33 = vadd.f32 %v1413_v3, %v1412_v62 }
 0x3cb   : > { %1883 = vpush %v1414_v33 }
 0x3fc   : > { %s1884_s14 = spop %1883 }
 0x3fd   : > { %v1416_v13 = vstv %s1884_s14 }
 0x3fe   : > { %v1417_v51 = vmul.f32 0.00012207031, %v1416_v13 }
 0x400   : > { %v2994_v4 = vsub.f32 %v2919_v50, %v1417_v51  ;;  %v2997_v7 = vsub.f32 %v2925_v56, %v1417_v51  ;;  %v3000_v23 = vsub.f32 %v2935_v43, %v1417_v51  ;;  %v3002_v12 = vsub.f32 %v1814_v55, %v1417_v51 }
 0x401   : > { %v3008_v19 = vsub.f32 %v1815_v39, %v1417_v51  ;;  %v3012_v20 = vsub.f32 %v1816_v61, %v1417_v51  ;;  %v3018_v49 = vsub.f32 %v1817_v6, %v1417_v51  ;;  %v3023_v3 = vsub.f32 %v1818_v45, %v1417_v51 }
 0x402   : > { %v1434_v15 = vmul.f32 %v2994_v4, %v2994_v4  ;;  %v1435_v16 = vmul.f32 %v2997_v7, %v2997_v7  ;;  %v1436_v50 = vmul.f32 %v3000_v23, %v3000_v23  ;;  %v1437_v56 = vmul.f32 %v3002_v12, %v3002_v12 }
 0x403   : > { %v1438_v35 = vmul.f32 %v3008_v19, %v3008_v19  ;;  %v1439_v61 = vmul.f32 %v3012_v20, %v3012_v20  ;;  %v1440_v6 = vmul.f32 %v3018_v49, %v3018_v49  ;;  %v1441_v45 = vmul.f32 %v3023_v3, %v3023_v3 }
 0x404   : > { %v1450_v43 = vsel %vm753_vm1, %v1434_v15, 0.0  ;;  %v1451_v55 = vsel %vm753_vm1, %v1435_v16, 0.0  ;;  %v1453_v39 = vsel %vm753_vm1, %v1436_v50, 0.0  ;;  %v1455_v33 = vsel %vm753_vm1, %v1437_v56, 0.0 }
 0x405   : > { %v1452_v47 = vadd.f32 %v1451_v55, %v1450_v43  ;;  %v3028_v15 = vsub.f32 %v1819_v26, %v1417_v51  ;;  %v1457_v16 = vsel %vm753_vm1, %v1438_v35, 0.0  ;;  %v3033_v55 = vsub.f32 %v1820_v37, %v1417_v51 }
 0x406   : > { %v1459_v50 = vsel %vm753_vm1, %v1439_v61, 0.0  ;;  %v1461_v56 = vsel %vm753_vm1, %v1440_v6, 0.0  ;;  %v1463_v35 = vsel %vm753_vm1, %v1441_v45, 0.0  ;;  %v3050_v61 = vsub.f32 %v2972_v53, %v1417_v51 }
 0x407   : > { %v1454_v62 = vadd.f32 %v1453_v39, %v1452_v47  ;;  %v3038_v39 = vsub.f32 %v1821_v29, %v1417_v51  ;;  %v1442_v26 = vmul.f32 %v3028_v15, %v3028_v15  ;;  %v1443_v37 = vmul.f32 %v3033_v55, %v3033_v55 }
 0x408   : > { %v3056_v6 = vsub.f32 %v2977_v34, %v1417_v51  ;;  %v3062_v45 = vsub.f32 %v2982_v0, %v1417_v51  ;;  %v1446_v53 = vmul.f32 %v3050_v61, %v3050_v61 }
 0x409   : > { %v1456_v13 = vadd.f32 %v1455_v33, %v1454_v62  ;;  %v3044_v33 = vsub.f32 %v2968_v52, %v1417_v51  ;;  %v1444_v29 = vmul.f32 %v3038_v39, %v3038_v39 }
 0x40a   : > { %v1447_v34 = vmul.f32 %v3056_v6, %v3056_v6  ;;  %v1473_v0 = vsel %vm753_vm1, %v1446_v53, 0.0 }
 0x40b   : > { %v1458_v43 = vadd.f32 %v1457_v16, %v1456_v13  ;;  %v1465_v16 = vsel %vm753_vm1, %v1442_v26, 0.0  ;;  %v1445_v52 = vmul.f32 %v3044_v33, %v3044_v33  ;;  %v3068_v26 = vsub.f32 %v2987_v54, %v1417_v51 }
 0x40d   : > { %v1460_v47 = vadd.f32 %v1459_v50, %v1458_v43  ;;  %v1467_v50 = vsel %vm753_vm1, %v1443_v37, 0.0  ;;  %v1448_v37 = vmul.f32 %v3062_v45, %v3062_v45 }
 0x40f   : > { %v1462_v62 = vadd.f32 %v1461_v56, %v1460_v47  ;;  %v1469_v56 = vsel %vm753_vm1, %v1444_v29, 0.0  ;;  %v1475_v29 = vsel %vm753_vm1, %v1447_v34, 0.0  ;;  %v1477_v54 = vsel %vm753_vm1, %v1448_v37, 0.0 }
 0x411   : > { %v1464_v13 = vadd.f32 %v1463_v35, %v1462_v62  ;;  %v1471_v35 = vsel %vm753_vm1, %v1445_v52, 0.0 }
 0x413   : > { %v1466_v43 = vadd.f32 %v1465_v16, %v1464_v13 }
 0x415   : > { %v1468_v47 = vadd.f32 %v1467_v50, %v1466_v43  ;;  %v1449_v43 = vmul.f32 %v3068_v26, %v3068_v26 }
 0x417   : > { %v1470_v62 = vadd.f32 %v1469_v56, %v1468_v47  ;;  %v1479_v47 = vsel %vm753_vm1, %v1449_v43, 0.0 }
 0x419   : > { %v1472_v13 = vadd.f32 %v1471_v35, %v1470_v62 }
 0x41b   : > { %v1474_v16 = vadd.f32 %v1473_v0, %v1472_v13 }
 0x41d   : > { %v1476_v50 = vadd.f32 %v1475_v29, %v1474_v16 }
 0x41f   : > { %v1478_v51 = vadd.f32 %v1477_v54, %v1476_v50 }
 0x421   : > { %v1480_v56 = vadd.f32 %v1479_v47, %v1478_v51 }
 0x423   : > { %1481 = vadd.xlane.f32.xlu0 %v1480_v56 }
 0x496   : > { %v1482_v52 = vpop.xlane.xlu0 %1481 }
 0x497   : > { %v1483_v62 = vrot.slane %v1482_v52, 4 }
 0x499   : > { %v1484_v35 = vadd.f32 %v1483_v62, %v1482_v52 }
 0x49b   : > { %v1485_v41 = vrot.slane %v1484_v35, 2 }
 0x49d   : > { %v1486_v18 = vadd.f32 %v1485_v41, %v1484_v35 }
 0x49f   : > { %v1487_v53 = vrot.slane %v1486_v18, 1 }
 0x4a1   : > { %v1488_v13 = vadd.f32 %v1487_v53, %v1486_v18 }
 0x4a3   : > { %1885 = vpush %v1488_v13 }
 0x4d4   : > { %s1886_s20 = spop %1885 }
 0x4d5   : > { %v1490_v0 = vstv %s1886_s20 }
 0x4d6   : > { %v1491_v10 = vmul.f32 0.00012207031, %v1490_v0 }
 0x4d8   : > { %v1492_v34 = vadd.f32 1e-05, %v1491_v10 }
 0x4da   : > { %1965 = vrsqrt.f32 %v1492_v34  ;;  %vm1499_vm6 = vweird.f32 %v1492_v34 }
 0x4e0   : > { %v1966_v16 = vpop.eup %1965 }
 0x4e1   : > { %v1494_v37 = vmul.f32 %v1966_v16, %v1492_v34  ;;  %vm1500_vm5 = vweird.f32 %v1966_v16 }
 0x4e2   : > { %vm1501_vm7 = vmor %vm1499_vm6, %vm1500_vm5 }
 0x4e3   : > { %v1495_v29 = vmul.f32 %v1966_v16, %v1494_v37 }
 0x4e5   : > { %v1496_v50 = vmul.f32 0.5, %v1495_v29 }
 0x4e7   : > { %v1497_v43 = vsub.f32 1.5, %v1496_v50 }
 0x4e9   : > { %v1498_v54 = vmul.f32 %v1966_v16, %v1497_v43 }
 0x4eb   : > { %v1502_v51 = vsel %vm1501_vm7, %v1966_v16, %v1498_v54 }
 0x4ec   : > { %v1503_v41 = vmul.f32 %v1502_v51, %v2994_v4  ;;  %v1504_v18 = vmul.f32 %v1502_v51, %v2997_v7  ;;  %v1505_v47 = vmul.f32 %v1502_v51, %v3000_v23  ;;  %v1506_v56 = vmul.f32 %v1502_v51, %v3002_v12 }
 0x4ed   : > { %v1507_v10 = vmul.f32 %v1502_v51, %v3008_v19  ;;  %v1508_v52 = vmul.f32 %v1502_v51, %v3012_v20  ;;  %v1509_v62 = vmul.f32 %v1502_v51, %v3018_v49  ;;  %v1510_v4 = vmul.f32 %v1502_v51, %v3023_v3 }
 0x4ee   : > { %v1519_v35 = vmul.f32 %v1503_v41, %v2793_v9  ;;  %v1520_v53 = vmul.f32 %v1504_v18, %v2797_v11  ;;  %v1521_v13 = vmul.f32 %v1505_v47, %v2795_v48  ;;  %v1522_v7 = vmul.f32 %v1506_v56, %v2801_v17 }
 0x4ef   : > { %v1511_v23 = vmul.f32 %v1502_v51, %v3028_v15  ;;  %v1523_v12 = vmul.f32 %v1507_v10, %v2805_v57  ;;  %v1512_v19 = vmul.f32 %v1502_v51, %v3033_v55  ;;  %v1513_v20 = vmul.f32 %v1502_v51, %v3038_v39 }
 0x4f0   : > { %v1524_v9 = vmul.f32 %v1508_v52, %v2809_v25  ;;  %v1525_v11 = vmul.f32 %v1509_v62, %v2815_v28  ;;  %v1535_v48 = vadd.f32 %v1519_v35, %v2799_v14  ;;  %v1536_v49 = vadd.f32 %v1520_v53, %v2811_v60 }
 0x4f1   : > { %v1537_v17 = vadd.f32 %v1521_v13, %v2803_v21  ;;  %v1514_v3 = vmul.f32 %v1502_v51, %v3044_v33  ;;  %v1526_v57 = vmul.f32 %v1510_v4, %v2821_v31  ;;  %v1538_v15 = vadd.f32 %v1522_v7, %v2807_v24 }
 0x4f2   : > { %v1515_v55 = vmul.f32 %v1502_v51, %v3050_v61  ;;  %v1527_v25 = vmul.f32 %v1511_v23, %v2817_v63  ;;  %v1539_v28 = vadd.f32 %v1523_v12, %v2813_v27  ;;  %1827 = vst.msk [vmem:[%s2257_s15 + $0x80] sm:$0xff] %vm753_vm1, %v1535_v48  ;;  %v1516_v14 = vmul.f32 %v1502_v51, %v3056_v6 }
 0x4f3   : > { %v1528_v21 = vmul.f32 %v1512_v19, %v2831_v40  ;;  %v1540_v60 = vadd.f32 %v1524_v9, %v2819_v30  ;;  %1828 = vst.msk [vmem:[%s2257_s15 + $0x88] sm:$0xff] %vm753_vm1, %v1536_v49  ;;  %v1517_v24 = vmul.f32 %v1502_v51, %v3062_v45  ;;  %v1529_v31 = vmul.f32 %v1513_v20, %v2833_v44 }
 0x4f4   : > { %v1541_v63 = vadd.f32 %v1525_v11, %v2825_v36  ;;  %1829 = vst.msk [vmem:[%s2257_s15 + $0x90] sm:$0xff] %vm753_vm1, %v1537_v17  ;;  %v1518_v27 = vmul.f32 %v1502_v51, %v3068_v26  ;;  %v1530_v39 = vmul.f32 %v1514_v3, %v2829_v38  ;;  %v1542_v40 = vadd.f32 %v1526_v57, %v2827_v5 }
 0x4f5   : > { %1830 = vst.msk [vmem:[%s2257_s15 + $0x98] sm:$0xff] %vm753_vm1, %v1538_v15  ;;  %v1531_v30 = vmul.f32 %v1515_v55, %v2843_v59  ;;  %v1543_v33 = vadd.f32 %v1527_v25, %v2823_v2  ;;  %v1532_v36 = vmul.f32 %v1516_v14, %v2845_v1  ;;  %v1544_v44 = vadd.f32 %v1528_v21, %v2837_v46  ;;  %v3202_v1 = vld [vmem:[#allocation5_spill] sm:$0xff] }
 0x4f6   : > { %1831 = vst.msk [vmem:[%s2257_s15 + $0xa0] sm:$0xff] %vm753_vm1, %v1539_v28  ;;  %v1533_v5 = vmul.f32 %v1517_v24, %v2841_v58  ;;  %v1545_v38 = vadd.f32 %v1529_v31, %v2839_v32  ;;  %v1534_v2 = vmul.f32 %v1518_v27, %v2905_v42  ;;  %v1546_v59 = vadd.f32 %v1530_v39, %v2835_v8  ;;  %v3203_v58 = vld [vmem:[#allocation4_spill] sm:$0xff]  ;;  %v3204_v32 = vld [vmem:[#allocation6_spill] sm:$0xff] }
 0x4f7   : > { %1832 = vst.msk [vmem:[%s2257_s15 + $0xa8] sm:$0xff] %vm753_vm1, %v1540_v60  ;;  %v1547_v46 = vadd.f32 %v1531_v30, %v2861_v22  ;;  %v1548_v61 = vadd.f32 %v1532_v36, %v3202_v1 }
 0x4f8   : > { %1833 = vst.msk [vmem:[%s2257_s15 + $0xb0] sm:$0xff] %vm753_vm1, %v1541_v63  ;;  %v1549_v6 = vadd.f32 %v1533_v5, %v3203_v58  ;;  %v1550_v45 = vadd.f32 %v1534_v2, %v3204_v32 }
 0x4f9   : > { %1834 = vst.msk [vmem:[%s2257_s15 + $0xb8] sm:$0xff] %vm753_vm1, %v1542_v40 }
 0x4fa   : > { %1835 = vst.msk [vmem:[%s2257_s15 + $0xc0] sm:$0xff] %vm753_vm1, %v1543_v33 }
 0x4fb   : > { %1836 = vst.msk [vmem:[%s2257_s15 + $0xc8] sm:$0xff] %vm753_vm1, %v1544_v44 }
 0x4fc   : > { %1837 = vst.msk [vmem:[%s2257_s15 + $0xd0] sm:$0xff] %vm753_vm1, %v1545_v38 }
 0x4fd   : > { %1838 = vst.msk [vmem:[%s2257_s15 + $0xd8] sm:$0xff] %vm753_vm1, %v1546_v59 }
 0x4fe   : > { %1839 = vst.msk [vmem:[%s2257_s15 + $0xe0] sm:$0xff] %vm753_vm1, %v1547_v46 }
 0x4ff   : > { %1840 = vst.msk [vmem:[%s2257_s15 + $0xe8] sm:$0xff] %vm753_vm1, %v1548_v61 }
 0x500   : > { %1841 = vst.msk [vmem:[%s2257_s15 + $0xf0] sm:$0xff] %vm753_vm1, %v1549_v6 }
 0x501   : > { %1842 = vst.msk [vmem:[%s2257_s15 + $0xf8] sm:$0xff] %vm753_vm1, %v1550_v45 }
 0x502 PF: > { %s15_s26 = sadd.s32 1, %s2037_s26   ;;  %s3205_s18 = smov %s2009_s19 }
 0x503   : > { %p12_p2 = scmp.ge.s32.totalorder %s15_s26, 6   ;;  %s3206_s19 = smov %s2135_s7 }
 0x504   : > { %s3207_s20 = smov %s2017_s21  ;;  %s3208_s21 = smov %s2145_s12 }
 0x505   : > { %s3209_s22 = smov %s2029_s24  ;;  %s3210_s23 = smov %s2033_s25 }
 0x506   : > { %s3211_s24 = smov %s3214_s27  ;;  %s3212_s25 = smov %s3218_s28 }
 0x507   :  { %14 = sbr.rel (!%p12_p2) target bundleno = 5 (0x5), region = 173 }

</bundles_post_ra>
